<compile_context>
chip_gen: v7x
topology: tpu7x:2x2x1
jax: 0.10.0
libtpu: 0.0.40
codegen_flags: <defaults>
</compile_context>

<pallas_src>
import jax
import jax.numpy as jnp
from jax import lax
from jax.experimental import pallas as pl
from jax.experimental.pallas import tpu as pltpu

BN_EPS = 1e-5


def _round_up(x, m):
    return (x + m - 1) // m * m


def _conv_stats_kernel(p_ref, w_ref, h_ref, st_ref):
    """One M-tile of the conv: (TM, Kp) @ (Kp, Cp) + per-channel sum/sumsq.

    p_ref : (TM, Kp)   bf16 im2col patches (zero-padded rows / K tail)
    w_ref : (Kp, Cp)   bf16 weights (27 taps folded into K, Cout padded to Cp)
    h_ref : (TM, Cp)   bf16 conv output tile (pre-BN; conv bias omitted -- it
                       cancels exactly under training-mode BatchNorm)
    st_ref: (1, 2, Cp) f32  [row-sum, row-sum-of-squares] for this tile
    """
    acc = jnp.dot(p_ref[...], w_ref[...], preferred_element_type=jnp.float32)
    h_ref[...] = acc.astype(h_ref.dtype)
    s1 = jnp.sum(acc, axis=0, keepdims=True)          # (1, Cp)
    s2 = jnp.sum(acc * acc, axis=0, keepdims=True)    # (1, Cp)
    st_ref[...] = jnp.concatenate([s1, s2], axis=0)[None, :, :]


def _bn_relu_kernel(h_ref, sc_ref, sh_ref, o_ref):
    """Fused BatchNorm affine + ReLU on one lane-dense (TM, Cp) tile."""
    y = h_ref[...].astype(jnp.float32) * sc_ref[...] + sh_ref[...]
    o_ref[...] = jnp.maximum(y, 0.0).astype(o_ref.dtype)


def _conv_bn_relu_block(x_ndhwc, w, gamma, beta, *, out_dtype, tm=512):
    """One (Conv3d k=3 pad=1) -> BatchNorm3d(training stats) -> ReLU block.

    x_ndhwc: (N, D, H, W, Cin); w: (27, Cin, Cout), taps in (kd, kh, kw) order.
    Returns (N, D, H, W, Cout) in out_dtype.
    """
    N, D, H, W, Cin = x_ndhwc.shape
    Cout = w.shape[-1]
    M = N * D * H * W
    K = 27 * Cin
    Kp = _round_up(K, 128)        # MXU-friendly contraction width
    Cp = _round_up(Cout, 128)     # lane-dense output channels
    Mp = _round_up(M, tm)
    n_tiles = Mp // tm

    # ---- glue: im2col, taps folded into the contraction (K) axis ----
    xp = jnp.pad(x_ndhwc, ((0, 0), (1, 1), (1, 1), (1, 1), (0, 0)))
    cols = [xp[:, kd:kd + D, kh:kh + H, kw:kw + W, :]
            for kd in range(3) for kh in range(3) for kw in range(3)]
    pat = jnp.concatenate(cols, axis=-1).reshape(M, K)
    pat = jnp.pad(pat, ((0, Mp - M), (0, Kp - K))).astype(jnp.bfloat16)
    wmat = jnp.pad(w.reshape(K, Cout).astype(jnp.float32),
                   ((0, Kp - K), (0, Cp - Cout))).astype(jnp.bfloat16)

    # ---- pass 1: tiled conv matmul + per-tile BN statistics ----
    # Tiles are tiny vs VMEM even double-buffered (<~1.5 MiB total), so the same
    # config is safe on v5e/v6e (128 MiB) and v7x (64 MiB per TC).
    h, stats = pl.pallas_call(
        _conv_stats_kernel,
        out_shape=(jax.ShapeDtypeStruct((Mp, Cp), jnp.bfloat16),
                   jax.ShapeDtypeStruct((n_tiles, 2, Cp), jnp.float32)),
        grid=(n_tiles,),
        in_specs=[pl.BlockSpec((tm, Kp), lambda i: (i, 0)),
                  pl.BlockSpec((Kp, Cp), lambda i: (0, 0))],
        out_specs=(pl.BlockSpec((tm, Cp), lambda i: (i, 0)),
                   pl.BlockSpec((1, 2, Cp), lambda i: (i, 0, 0))),
        compiler_params=pltpu.CompilerParams(
            dimension_semantics=("parallel",),          # megacore split on v7x
            vmem_limit_bytes=32 * 1024 * 1024),
    )(pat, wmat)

    # ---- glue: per-channel stat combine (zero-padded rows contribute 0) ----
    tot = jnp.sum(stats, axis=0)                        # (2, Cp)
    mean = tot[0] / M
    var = jnp.maximum(tot[1] / M - mean * mean, 0.0)
    g = jnp.pad(gamma.astype(jnp.float32), (0, Cp - Cout))
    b = jnp.pad(beta.astype(jnp.float32), (0, Cp - Cout))
    scale = g * lax.rsqrt(var + BN_EPS)
    shift = b - mean * scale

    # ---- pass 2: fused BN affine + ReLU on lane-dense tiles ----
    # Alias output onto the pre-BN buffer when dtypes match (intermediate block)
    # so no extra (Mp, Cp) HBM allocation is needed.
    aliases = {0: 0} if out_dtype == jnp.bfloat16 else {}
    y = pl.pallas_call(
        _bn_relu_kernel,
        out_shape=jax.ShapeDtypeStruct((Mp, Cp), out_dtype),
        grid=(n_tiles,),
        in_specs=[pl.BlockSpec((tm, Cp), lambda i: (i, 0)),
                  pl.BlockSpec((1, Cp), lambda i: (0, 0)),
                  pl.BlockSpec((1, Cp), lambda i: (0, 0))],
        out_specs=pl.BlockSpec((tm, Cp), lambda i: (i, 0)),
        input_output_aliases=aliases,
        compiler_params=pltpu.CompilerParams(
            dimension_semantics=("parallel",),
            vmem_limit_bytes=32 * 1024 * 1024),
    )(h, scale.reshape(1, Cp), shift.reshape(1, Cp))

    return y[:M, :Cout].reshape(N, D, H, W, Cout)


def inconv_forward(x_ncdhw, params):
    """Pallas implementation of inconv.forward (double_conv). x: NCDHW, f32 out."""
    x = jnp.transpose(x_ncdhw, (0, 2, 3, 4, 1)).astype(jnp.float32)  # -> NDHWC
    # Intermediate activation stays NDHWC and is kept in bf16 (it is re-cast to
    # bf16 for the second block's MXU matmul anyway).
    h = _conv_bn_relu_block(x, params["w1"], params["g1"], params["be1"],
                            out_dtype=jnp.bfloat16)
    y = _conv_bn_relu_block(h, params["w2"], params["g2"], params["be2"],
                            out_dtype=jnp.float32)
    return jnp.transpose(y, (0, 4, 1, 2, 3))                         # -> NCDHW


def init_params(key, in_ch, out_ch):
    """Deterministic synthetic parameters matching the module's __init__.

    Conv3d(in, out, k=3): weight stored as (27, in, out), taps in (kd, kh, kw)
    order; bias (out,) (kept for interface fidelity; it cancels under
    training-mode BatchNorm so the kernel path never applies it).
    BatchNorm3d(out): gamma=1, beta=0 (PyTorch default affine init).
    """
    k1, k2, k3, k4 = jax.random.split(key, 4)
    fan1 = in_ch * 27
    fan2 = out_ch * 27
    return {
        "w1": jax.random.normal(k1, (27, in_ch, out_ch), jnp.float32) / jnp.sqrt(fan1),
        "b1": 0.05 * jax.random.normal(k2, (out_ch,), jnp.float32),
        "g1": jnp.ones((out_ch,), jnp.float32),
        "be1": jnp.zeros((out_ch,), jnp.float32),
        "w2": jax.random.normal(k3, (27, out_ch, out_ch), jnp.float32) / jnp.sqrt(fan2),
        "b2": 0.05 * jax.random.normal(k4, (out_ch,), jnp.float32),
        "g2": jnp.ones((out_ch,), jnp.float32),
        "be2": jnp.zeros((out_ch,), jnp.float32),
    }


# ---------------- pure-JAX reference (f32, HIGHEST) for correctness check ----
def _ref_block(x_ndhwc, w, b, gamma, beta):
    w_dhwio = w.reshape(3, 3, 3, w.shape[1], w.shape[2])
    y = lax.conv_general_dilated(
        x_ndhwc, w_dhwio, window_strides=(1, 1, 1), padding="SAME",
        dimension_numbers=("NDHWC", "DHWIO", "NDHWC"),
        precision=lax.Precision.HIGHEST) + b
    mean = jnp.mean(y, axis=(0, 1, 2, 3), keepdims=True)
    var = jnp.mean((y - mean) ** 2, axis=(0, 1, 2, 3), keepdims=True)
    y = (y - mean) * lax.rsqrt(var + BN_EPS) * gamma + beta
    return jnp.maximum(y, 0.0)


def inconv_reference(x_ncdhw, params):
    x = jnp.transpose(x_ncdhw, (0, 2, 3, 4, 1))
    h = _ref_block(x, params["w1"], params["b1"], params["g1"], params["be1"])
    y = _ref_block(h, params["w2"], params["b2"], params["g2"], params["be2"])
    return jnp.transpose(y, (0, 4, 1, 2, 3))


if __name__ == "__main__":
    N, in_ch, out_ch = 2, 4, 8
    D = H = W = 8

    key = jax.random.PRNGKey(0)
    kx, kp = jax.random.split(key)
    x = jax.random.normal(kx, (N, in_ch, D, H, W), jnp.float32)  # NCDHW, like PyTorch
    params = init_params(kp, in_ch, out_ch)

    fwd = jax.jit(inconv_forward)
    out = jax.block_until_ready(fwd(x, params))
    assert out.shape == (N, out_ch, D, H, W), out.shape
    assert out.dtype == jnp.float32, out.dtype

    ref = jax.block_until_ready(inconv_reference(x, params))
    max_err = float(jnp.max(jnp.abs(out - ref)))
    # Kernel uses the native bf16-input / f32-accumulate MXU path (reference is
    # f32 HIGHEST), so allow a bf16-level tolerance on the BN-normalised output.
    assert jnp.allclose(out, ref, atol=3e-2, rtol=3e-2), max_err

    print("KERNEL_OK")
</pallas_src>

<mosaic_0001>
module attributes {stable_mosaic.version = 11 : i64} {
  func.func @_conv_stats_kernel(%arg0: i32, %arg1: memref<512x128xbf16, #tpu.memory_space<vmem>>, %arg2: memref<128x128xbf16, #tpu.memory_space<vmem>>, %arg3: memref<512x128xbf16, #tpu.memory_space<vmem>>, %arg4: memref<1x2x128xf32, #tpu.memory_space<vmem>>) attributes {dimension_semantics = [#tpu.dimension_semantics<parallel>], iteration_bounds = array<i64: 2>, scalar_prefetch = 0 : i64, scratch_operands = 0 : i64, tpu.core_type = #tpu.core_type<tc>, window_params = [{transform_indices = @transform_0, window_bounds = array<i64: 512, 128>}, {pipeline_mode = #tpu.pipeline_mode<synchronous>, transform_indices = @transform_1, window_bounds = array<i64: 128, 128>}, {transform_indices = @transform_2, window_bounds = array<i64: 512, 128>}, {transform_indices = @transform_3, window_bounds = array<i64: 1, 2, 128>}]} {
    %c0 = arith.constant 0 : index
    %c0_0 = arith.constant 0 : index
    %0 = vector.load %arg1[%c0, %c0_0] : memref<512x128xbf16, #tpu.memory_space<vmem>>, vector<512x128xbf16>
    %c0_1 = arith.constant 0 : index
    %c0_2 = arith.constant 0 : index
    %1 = vector.load %arg2[%c0_1, %c0_2] : memref<128x128xbf16, #tpu.memory_space<vmem>>, vector<128x128xbf16>
    %cst = arith.constant dense<0.000000e+00> : vector<512x128xf32>
    %2 = tpu.matmul %0, %1, %cst {dimension_numbers = #tpu.dot_dimension_numbers<[1], [0], [0], [1], [0, 0, 1, 1], [], []>} : vector<512x128xbf16>, vector<128x128xbf16>, vector<512x128xf32> -> vector<512x128xf32>
    %3 = arith.truncf %2 : vector<512x128xf32> to vector<512x128xbf16>
    %c0_3 = arith.constant 0 : index
    %c0_4 = arith.constant 0 : index
    %4 = vector.load %arg3[%c0_3, %c0_4] : memref<512x128xbf16, #tpu.memory_space<vmem>>, vector<512x128xbf16>
    tpu.vector_store %arg3[%c0_3, %c0_4], %3 {strides = array<i32>} : memref<512x128xbf16, #tpu.memory_space<vmem>>, vector<512x128xbf16>,
    %cst_5 = arith.constant dense<0.000000e+00> : vector<128xf32>
    %5 = vector.multi_reduction <add>, %2, %cst_5 [0] : vector<512x128xf32> to vector<128xf32>
    %6 = vector.shape_cast %5 : vector<128xf32> to vector<1x128xf32>
    %7 = arith.mulf %2, %2 : vector<512x128xf32>
    %cst_6 = arith.constant dense<0.000000e+00> : vector<128xf32>
    %8 = vector.multi_reduction <add>, %7, %cst_6 [0] : vector<512x128xf32> to vector<128xf32>
    %9 = vector.shape_cast %8 : vector<128xf32> to vector<1x128xf32>
    %10 = tpu.concatenate %6, %9 in 0 : vector<1x128xf32>, vector<1x128xf32> -> vector<2x128xf32>
    %11 = vector.shape_cast %10 : vector<2x128xf32> to vector<1x2x128xf32>
    %c0_7 = arith.constant 0 : index
    %c0_8 = arith.constant 0 : index
    %c0_9 = arith.constant 0 : index
    %12 = vector.load %arg4[%c0_7, %c0_8, %c0_9] : memref<1x2x128xf32, #tpu.memory_space<vmem>>, vector<1x2x128xf32>
    tpu.vector_store %arg4[%c0_7, %c0_8, %c0_9], %11 {strides = array<i32>} : memref<1x2x128xf32, #tpu.memory_space<vmem>>, vector<1x2x128xf32>,
    return
  }
  func.func @transform_0(%arg0: i32) -> (i32, i32) {
    %c0_i32 = arith.constant 0 : i32
    %c0_i32_0 = arith.constant 0 : i32
    return %arg0, %c0_i32 : i32, i32
  }
  func.func @transform_1(%arg0: i32) -> (i32, i32) {
    %c0_i32 = arith.constant 0 : i32
    %c0_i32_0 = arith.constant 0 : i32
    %c0_i32_1 = arith.constant 0 : i32
    return %c0_i32, %c0_i32_0 : i32, i32
  }
  func.func @transform_2(%arg0: i32) -> (i32, i32) {
    %c0_i32 = arith.constant 0 : i32
    %c0_i32_0 = arith.constant 0 : i32
    return %arg0, %c0_i32 : i32, i32
  }
  func.func @transform_3(%arg0: i32) -> (i32, i32, i32) {
    %c0_i32 = arith.constant 0 : i32
    %c0_i32_0 = arith.constant 0 : i32
    %c0_i32_1 = arith.constant 0 : i32
    return %arg0, %c0_i32, %c0_i32_0 : i32, i32, i32
  }
}

module attributes {stable_mosaic.version = 11 : i64} {
  func.func @_bn_relu_kernel(%arg0: i32, %arg1: memref<512x128xbf16, #tpu.memory_space<vmem>>, %arg2: memref<1x128xf32, #tpu.memory_space<vmem>>, %arg3: memref<1x128xf32, #tpu.memory_space<vmem>>, %arg4: memref<512x128xbf16, #tpu.memory_space<vmem>>) attributes {dimension_semantics = [#tpu.dimension_semantics<parallel>], iteration_bounds = array<i64: 2>, scalar_prefetch = 0 : i64, scratch_operands = 0 : i64, tpu.core_type = #tpu.core_type<tc>, window_params = [{transform_indices = @transform_0, window_bounds = array<i64: 512, 128>}, {pipeline_mode = #tpu.pipeline_mode<synchronous>, transform_indices = @transform_1, window_bounds = array<i64: 1, 128>}, {pipeline_mode = #tpu.pipeline_mode<synchronous>, transform_indices = @transform_2, window_bounds = array<i64: 1, 128>}, {transform_indices = @transform_3, window_bounds = array<i64: 512, 128>}]} {
    %c0 = arith.constant 0 : index
    %c0_0 = arith.constant 0 : index
    %0 = vector.load %arg1[%c0, %c0_0] : memref<512x128xbf16, #tpu.memory_space<vmem>>, vector<512x128xbf16>
    %1 = arith.extf %0 : vector<512x128xbf16> to vector<512x128xf32>
    %c0_1 = arith.constant 0 : index
    %c0_2 = arith.constant 0 : index
    %2 = vector.load %arg2[%c0_1, %c0_2] : memref<1x128xf32, #tpu.memory_space<vmem>>, vector<1x128xf32>
    %3 = vector.broadcast %2 : vector<1x128xf32> to vector<512x128xf32>
    %4 = arith.mulf %1, %3 : vector<512x128xf32>
    %c0_3 = arith.constant 0 : index
    %c0_4 = arith.constant 0 : index
    %5 = vector.load %arg3[%c0_3, %c0_4] : memref<1x128xf32, #tpu.memory_space<vmem>>, vector<1x128xf32>
    %6 = vector.broadcast %5 : vector<1x128xf32> to vector<512x128xf32>
    %7 = arith.addf %4, %6 : vector<512x128xf32>
    %cst = arith.constant 0.000000e+00 : f32
    %8 = vector.broadcast %cst : f32 to vector<512x128xf32>
    %9 = arith.maximumf %7, %8 : vector<512x128xf32>
    %10 = arith.truncf %9 : vector<512x128xf32> to vector<512x128xbf16>
    %c0_5 = arith.constant 0 : index
    %c0_6 = arith.constant 0 : index
    %11 = vector.load %arg4[%c0_5, %c0_6] : memref<512x128xbf16, #tpu.memory_space<vmem>>, vector<512x128xbf16>
    tpu.vector_store %arg4[%c0_5, %c0_6], %10 {strides = array<i32>} : memref<512x128xbf16, #tpu.memory_space<vmem>>, vector<512x128xbf16>,
    return
  }
  func.func @transform_0(%arg0: i32) -> (i32, i32) {
    %c0_i32 = arith.constant 0 : i32
    %c0_i32_0 = arith.constant 0 : i32
    return %arg0, %c0_i32 : i32, i32
  }
  func.func @transform_1(%arg0: i32) -> (i32, i32) {
    %c0_i32 = arith.constant 0 : i32
    %c0_i32_0 = arith.constant 0 : i32
    %c0_i32_1 = arith.constant 0 : i32
    return %c0_i32, %c0_i32_0 : i32, i32
  }
  func.func @transform_2(%arg0: i32) -> (i32, i32) {
    %c0_i32 = arith.constant 0 : i32
    %c0_i32_0 = arith.constant 0 : i32
    %c0_i32_1 = arith.constant 0 : i32
    return %c0_i32, %c0_i32_0 : i32, i32
  }
  func.func @transform_3(%arg0: i32) -> (i32, i32) {
    %c0_i32 = arith.constant 0 : i32
    %c0_i32_0 = arith.constant 0 : i32
    return %arg0, %c0_i32 : i32, i32
  }
}

module attributes {stable_mosaic.version = 11 : i64} {
  func.func @_conv_stats_kernel(%arg0: i32, %arg1: memref<512x256xbf16, #tpu.memory_space<vmem>>, %arg2: memref<256x128xbf16, #tpu.memory_space<vmem>>, %arg3: memref<512x128xbf16, #tpu.memory_space<vmem>>, %arg4: memref<1x2x128xf32, #tpu.memory_space<vmem>>) attributes {dimension_semantics = [#tpu.dimension_semantics<parallel>], iteration_bounds = array<i64: 2>, scalar_prefetch = 0 : i64, scratch_operands = 0 : i64, tpu.core_type = #tpu.core_type<tc>, window_params = [{transform_indices = @transform_0, window_bounds = array<i64: 512, 256>}, {pipeline_mode = #tpu.pipeline_mode<synchronous>, transform_indices = @transform_1, window_bounds = array<i64: 256, 128>}, {transform_indices = @transform_2, window_bounds = array<i64: 512, 128>}, {transform_indices = @transform_3, window_bounds = array<i64: 1, 2, 128>}]} {
    %c0 = arith.constant 0 : index
    %c0_0 = arith.constant 0 : index
    %0 = vector.load %arg1[%c0, %c0_0] : memref<512x256xbf16, #tpu.memory_space<vmem>>, vector<512x256xbf16>
    %c0_1 = arith.constant 0 : index
    %c0_2 = arith.constant 0 : index
    %1 = vector.load %arg2[%c0_1, %c0_2] : memref<256x128xbf16, #tpu.memory_space<vmem>>, vector<256x128xbf16>
    %cst = arith.constant dense<0.000000e+00> : vector<512x128xf32>
    %2 = tpu.matmul %0, %1, %cst {dimension_numbers = #tpu.dot_dimension_numbers<[1], [0], [0], [1], [0, 0, 1, 1], [], []>} : vector<512x256xbf16>, vector<256x128xbf16>, vector<512x128xf32> -> vector<512x128xf32>
    %3 = arith.truncf %2 : vector<512x128xf32> to vector<512x128xbf16>
    %c0_3 = arith.constant 0 : index
    %c0_4 = arith.constant 0 : index
    %4 = vector.load %arg3[%c0_3, %c0_4] : memref<512x128xbf16, #tpu.memory_space<vmem>>, vector<512x128xbf16>
    tpu.vector_store %arg3[%c0_3, %c0_4], %3 {strides = array<i32>} : memref<512x128xbf16, #tpu.memory_space<vmem>>, vector<512x128xbf16>,
    %cst_5 = arith.constant dense<0.000000e+00> : vector<128xf32>
    %5 = vector.multi_reduction <add>, %2, %cst_5 [0] : vector<512x128xf32> to vector<128xf32>
    %6 = vector.shape_cast %5 : vector<128xf32> to vector<1x128xf32>
    %7 = arith.mulf %2, %2 : vector<512x128xf32>
    %cst_6 = arith.constant dense<0.000000e+00> : vector<128xf32>
    %8 = vector.multi_reduction <add>, %7, %cst_6 [0] : vector<512x128xf32> to vector<128xf32>
    %9 = vector.shape_cast %8 : vector<128xf32> to vector<1x128xf32>
    %10 = tpu.concatenate %6, %9 in 0 : vector<1x128xf32>, vector<1x128xf32> -> vector<2x128xf32>
    %11 = vector.shape_cast %10 : vector<2x128xf32> to vector<1x2x128xf32>
    %c0_7 = arith.constant 0 : index
    %c0_8 = arith.constant 0 : index
    %c0_9 = arith.constant 0 : index
    %12 = vector.load %arg4[%c0_7, %c0_8, %c0_9] : memref<1x2x128xf32, #tpu.memory_space<vmem>>, vector<1x2x128xf32>
    tpu.vector_store %arg4[%c0_7, %c0_8, %c0_9], %11 {strides = array<i32>} : memref<1x2x128xf32, #tpu.memory_space<vmem>>, vector<1x2x128xf32>,
    return
  }
  func.func @transform_0(%arg0: i32) -> (i32, i32) {
    %c0_i32 = arith.constant 0 : i32
    %c0_i32_0 = arith.constant 0 : i32
    return %arg0, %c0_i32 : i32, i32
  }
  func.func @transform_1(%arg0: i32) -> (i32, i32) {
    %c0_i32 = arith.constant 0 : i32
    %c0_i32_0 = arith.constant 0 : i32
    %c0_i32_1 = arith.constant 0 : i32
    return %c0_i32, %c0_i32_0 : i32, i32
  }
  func.func @transform_2(%arg0: i32) -> (i32, i32) {
    %c0_i32 = arith.constant 0 : i32
    %c0_i32_0 = arith.constant 0 : i32
    return %arg0, %c0_i32 : i32, i32
  }
  func.func @transform_3(%arg0: i32) -> (i32, i32, i32) {
    %c0_i32 = arith.constant 0 : i32
    %c0_i32_0 = arith.constant 0 : i32
    %c0_i32_1 = arith.constant 0 : i32
    return %arg0, %c0_i32, %c0_i32_0 : i32, i32, i32
  }
}

module attributes {stable_mosaic.version = 11 : i64} {
  func.func @_bn_relu_kernel(%arg0: i32, %arg1: memref<512x128xbf16, #tpu.memory_space<vmem>>, %arg2: memref<1x128xf32, #tpu.memory_space<vmem>>, %arg3: memref<1x128xf32, #tpu.memory_space<vmem>>, %arg4: memref<512x128xf32, #tpu.memory_space<vmem>>) attributes {dimension_semantics = [#tpu.dimension_semantics<parallel>], iteration_bounds = array<i64: 2>, scalar_prefetch = 0 : i64, scratch_operands = 0 : i64, tpu.core_type = #tpu.core_type<tc>, window_params = [{transform_indices = @transform_0, window_bounds = array<i64: 512, 128>}, {pipeline_mode = #tpu.pipeline_mode<synchronous>, transform_indices = @transform_1, window_bounds = array<i64: 1, 128>}, {pipeline_mode = #tpu.pipeline_mode<synchronous>, transform_indices = @transform_2, window_bounds = array<i64: 1, 128>}, {transform_indices = @transform_3, window_bounds = array<i64: 512, 128>}]} {
    %c0 = arith.constant 0 : index
    %c0_0 = arith.constant 0 : index
    %0 = vector.load %arg1[%c0, %c0_0] : memref<512x128xbf16, #tpu.memory_space<vmem>>, vector<512x128xbf16>
    %1 = arith.extf %0 : vector<512x128xbf16> to vector<512x128xf32>
    %c0_1 = arith.constant 0 : index
    %c0_2 = arith.constant 0 : index
    %2 = vector.load %arg2[%c0_1, %c0_2] : memref<1x128xf32, #tpu.memory_space<vmem>>, vector<1x128xf32>
    %3 = vector.broadcast %2 : vector<1x128xf32> to vector<512x128xf32>
    %4 = arith.mulf %1, %3 : vector<512x128xf32>
    %c0_3 = arith.constant 0 : index
    %c0_4 = arith.constant 0 : index
    %5 = vector.load %arg3[%c0_3, %c0_4] : memref<1x128xf32, #tpu.memory_space<vmem>>, vector<1x128xf32>
    %6 = vector.broadcast %5 : vector<1x128xf32> to vector<512x128xf32>
    %7 = arith.addf %4, %6 : vector<512x128xf32>
    %cst = arith.constant 0.000000e+00 : f32
    %8 = vector.broadcast %cst : f32 to vector<512x128xf32>
    %9 = arith.maximumf %7, %8 : vector<512x128xf32>
    %c0_5 = arith.constant 0 : index
    %c0_6 = arith.constant 0 : index
    %10 = vector.load %arg4[%c0_5, %c0_6] : memref<512x128xf32, #tpu.memory_space<vmem>>, vector<512x128xf32>
    tpu.vector_store %arg4[%c0_5, %c0_6], %9 {strides = array<i32>} : memref<512x128xf32, #tpu.memory_space<vmem>>, vector<512x128xf32>,
    return
  }
  func.func @transform_0(%arg0: i32) -> (i32, i32) {
    %c0_i32 = arith.constant 0 : i32
    %c0_i32_0 = arith.constant 0 : i32
    return %arg0, %c0_i32 : i32, i32
  }
  func.func @transform_1(%arg0: i32) -> (i32, i32) {
    %c0_i32 = arith.constant 0 : i32
    %c0_i32_0 = arith.constant 0 : i32
    %c0_i32_1 = arith.constant 0 : i32
    return %c0_i32, %c0_i32_0 : i32, i32
  }
  func.func @transform_2(%arg0: i32) -> (i32, i32) {
    %c0_i32 = arith.constant 0 : i32
    %c0_i32_0 = arith.constant 0 : i32
    %c0_i32_1 = arith.constant 0 : i32
    return %c0_i32, %c0_i32_0 : i32, i32
  }
  func.func @transform_3(%arg0: i32) -> (i32, i32) {
    %c0_i32 = arith.constant 0 : i32
    %c0_i32_0 = arith.constant 0 : i32
    return %arg0, %c0_i32 : i32, i32
  }
}

</mosaic_0001>

<bundles_post_ra>
// kernel: inconv_forward.4
= control target key start
LH: loop header
LB: loop body
LE: loop exit
PB: predicated region body
PF: predicated region fallthrough
CT: control target
= control target key end

     0   :  { %s1990_s12 = smov 0   ;;  %s2306_s0 = inlined_call_operand.vmem [shape: bf16[1024,128], index: 0, kind: input, shape index: {}]   ;;  %s2307_s1 = inlined_call_operand.vmem [shape: bf16[128,128], index: 1, kind: input, shape index: {}]   ;;  %s2308_s2 = inlined_call_operand.vmem [shape: bf16[1024,128], index: 2, kind: output, shape index: {0}]   ;;  %s2309_s3 = inlined_call_operand.vmem [shape: f32[2,2,128], index: 3, kind: output, shape index: {1}]  }
   0x1 LB: > { %s1996_s13 = sadd.s32 4294967295, %s1968_s12   ;;  %p1411_p0 = scmp.ge.s32.totalorder %s1968_s12, 1  ;;  %s1968_s12 = sphi %s1990_s12, %s14_s12  }
   0x2   : > { %p141_p1 = scmp.lt.s32.totalorder %s1968_s12, 3 }
   0x4   : > { %p142_p2 = pnand %p1411_p0, %p141_p1 }
   0x5   : > { %v1922_v0 = vld [vmem:[%s2307_s1] sm:$0xff] (!%p142_p2)   ;;  %s1412_s16 = sshll.u32 (!%p142_p2), %s1996_s13, 6  ;;  %v1923_v1 = vld [vmem:[%s2307_s1 + $0x8] sm:$0xff] (!%p142_p2)   ;;  %v1924_v2 = vld [vmem:[%s2307_s1 + $0x10] sm:$0xff] (!%p142_p2)   ;;  %p181_p4 = scmp.lt.s32.totalorder (!%p142_p2), %s1996_s13, 1  ;;  %vm1317_vm0 = vcmask (!%p142_p2), 1040384  }
   0x6   : > { %145 = sbr.rel (%p142_p2) target bundleno = 395 (0x18b), region = 28  ;;  %p170_p3 = scmp.lt.s32.totalorder (!%p142_p2), %s1412_s16, 127  ;;  %1818 = vmatprep.subr.bf16.mxu0 (!%p142_p2), %v1922_v0  ;;  %1898 = vmatprep.subr.bf16.mxu1 (!%p142_p2), %v1922_v0  ;;  %v1925_v3 = vld [vmem:[%s2307_s1 + $0x18] sm:$0xff] (!%p142_p2)   ;;  %v1926_v5 = vld [vmem:[%s2307_s1 + $0x20] sm:$0xff] (!%p142_p2)   ;;  %v1927_v6 = vld [vmem:[%s2307_s1 + $0x28] sm:$0xff] (!%p142_p2)  }
   0x7   : > { %1819 = vmatpush3.bf16.msra.mxu0 (!%p142_p2), %v1922_v0  ;;  %1906 = vmatpush3.bf16.msra.mxu1 (!%p142_p2), %v1922_v0  ;;  %v1928_v7 = vld [vmem:[%s2307_s1 + $0x30] sm:$0xff] (!%p142_p2)   ;;  %v1929_v8 = vld [vmem:[%s2307_s1 + $0x38] sm:$0xff] (!%p142_p2)  }
   0x8   : > { %1820 = vmatprep.subr.bf16.mxu0 (!%p142_p2), %v1923_v1  ;;  %1899 = vmatprep.subr.bf16.mxu1 (!%p142_p2), %v1923_v1 }
   0xb   : > { %1821 = vmatpush3.bf16.msra.mxu0 (!%p142_p2), %v1923_v1  ;;  %1907 = vmatpush3.bf16.msra.mxu1 (!%p142_p2), %v1923_v1 }
   0xc   : > { %1822 = vmatprep.subr.bf16.mxu0 (!%p142_p2), %v1924_v2  ;;  %1900 = vmatprep.subr.bf16.mxu1 (!%p142_p2), %v1924_v2 }
   0xd   : > { %s2311_s16 = smov (!%p170_p3, %s1412_s16), 127  ;;  %s2313_s13 = smov (!%p181_p4, %s1996_s13), 1 }
   0xe   : > { %s1413_s21 = sshll.u32 %s2311_s16, 2  ;;  %s1416_s11 = sshll.u32 %s2313_s13, 1 }
   0xf   : > { %s2018_s24 = scalar_lea.vmem %s2306_s0, %s1413_s21  ;;  %1823 = vmatpush3.bf16.msra.mxu0 %v1924_v2  ;;  %1908 = vmatpush3.bf16.msra.mxu1 %v1924_v2  ;;  %s2076_s10 = scalar_lea.vmem %s2308_s2, %s1413_s21 }
  0x10   : > { %v1930_v4 = vld [vmem:[%s2018_s24] sm:$0xff]   ;;  %1824 = vmatprep.subr.bf16.mxu0 %v1925_v3  ;;  %1901 = vmatprep.subr.bf16.mxu1 %v1925_v3  ;;  %v1931_v10 = vld [vmem:[%s2018_s24 + $0x8] sm:$0xff]   ;;  %v1932_v11 = vld [vmem:[%s2018_s24 + $0x10] sm:$0xff]   ;;  %s184_s16 = scalar_lea.vmem %s2309_s3, %s1416_s11 }
  0x11   : > { %1834 = vmatprep.mubr.bf16.mxu0 %v1930_v4  ;;  %v1946_v9 = vld [vmem:[%s2018_s24 + $0x80] sm:$0xff]   ;;  %v1947_v12 = vld [vmem:[%s2018_s24 + $0x88] sm:$0xff]   ;;  %v1948_v13 = vld [vmem:[%s2018_s24 + $0x90] sm:$0xff]  }
  0x12   : > { %1866 = vmatprep.mubr.bf16.mxu1 %v1946_v9  ;;  %v1933_v14 = vld [vmem:[%s2018_s24 + $0x18] sm:$0xff]   ;;  %v1934_v15 = vld [vmem:[%s2018_s24 + $0x20] sm:$0xff]   ;;  %v1935_v18 = vld [vmem:[%s2018_s24 + $0x28] sm:$0xff]  }
  0x13   : > { %1825 = vmatpush3.bf16.msra.mxu0 %v1925_v3  ;;  %1909 = vmatpush3.bf16.msra.mxu1 %v1925_v3  ;;  %v1949_v16 = vld [vmem:[%s2018_s24 + $0x98] sm:$0xff]   ;;  %v1950_v17 = vld [vmem:[%s2018_s24 + $0xa0] sm:$0xff]   ;;  %v1951_v19 = vld [vmem:[%s2018_s24 + $0xa8] sm:$0xff]  }
  0x14   : > { %1826 = vmatprep.subr.bf16.mxu0 %v1926_v5  ;;  %1902 = vmatprep.subr.bf16.mxu1 %v1926_v5  ;;  %v1936_v20 = vld [vmem:[%s2018_s24 + $0x30] sm:$0xff]   ;;  %v1937_v22 = vld [vmem:[%s2018_s24 + $0x38] sm:$0xff]   ;;  %v1938_v24 = vld [vmem:[%s2018_s24 + $0x40] sm:$0xff]  }
  0x15   : > { %v1952_v21 = vld [vmem:[%s2018_s24 + $0xb0] sm:$0xff]   ;;  %v1953_v23 = vld [vmem:[%s2018_s24 + $0xb8] sm:$0xff]   ;;  %v1954_v25 = vld [vmem:[%s2018_s24 + $0xc0] sm:$0xff]  }
  0x16   : > { %v1939_v26 = vld [vmem:[%s2018_s24 + $0x48] sm:$0xff]   ;;  %v1940_v28 = vld [vmem:[%s2018_s24 + $0x50] sm:$0xff]   ;;  %v1941_v30 = vld [vmem:[%s2018_s24 + $0x58] sm:$0xff]  }
  0x17   : > { %1827 = vmatpush3.bf16.msra.mxu0 %v1926_v5  ;;  %1910 = vmatpush3.bf16.msra.mxu1 %v1926_v5  ;;  %v1955_v27 = vld [vmem:[%s2018_s24 + $0xc8] sm:$0xff]   ;;  %v1956_v29 = vld [vmem:[%s2018_s24 + $0xd0] sm:$0xff]   ;;  %v1957_v31 = vld [vmem:[%s2018_s24 + $0xd8] sm:$0xff]  }
  0x18   : > { %1828 = vmatprep.subr.bf16.mxu0 %v1927_v6  ;;  %1903 = vmatprep.subr.bf16.mxu1 %v1927_v6  ;;  %v1942_v32 = vld [vmem:[%s2018_s24 + $0x60] sm:$0xff]   ;;  %v1943_v34 = vld [vmem:[%s2018_s24 + $0x68] sm:$0xff]   ;;  %v1944_v36 = vld [vmem:[%s2018_s24 + $0x70] sm:$0xff]  }
  0x19   : > { %v1958_v33 = vld [vmem:[%s2018_s24 + $0xe0] sm:$0xff]   ;;  %v1959_v35 = vld [vmem:[%s2018_s24 + $0xe8] sm:$0xff]   ;;  %v1960_v37 = vld [vmem:[%s2018_s24 + $0xf0] sm:$0xff]  }
  0x1a   : > { %v1945_v38 = vld [vmem:[%s2018_s24 + $0x78] sm:$0xff]  }
  0x1b   : > { %1829 = vmatpush3.bf16.msra.mxu0 %v1927_v6  ;;  %1911 = vmatpush3.bf16.msra.mxu1 %v1927_v6  ;;  %v1961_v39 = vld [vmem:[%s2018_s24 + $0xf8] sm:$0xff]  }
  0x1c   : > { %1830 = vmatprep.subr.bf16.mxu0 %v1928_v7  ;;  %1904 = vmatprep.subr.bf16.mxu1 %v1928_v7 }
  0x1f   : > { %1831 = vmatpush3.bf16.msra.mxu0 %v1928_v7  ;;  %1912 = vmatpush3.bf16.msra.mxu1 %v1928_v7 }
  0x20   : > { %1832 = vmatprep.subr.bf16.mxu0 %v1929_v8  ;;  %1905 = vmatprep.subr.bf16.mxu1 %v1929_v8 }
  0x23   : > { %1833 = vmatpush3.bf16.msra.mxu0 %v1929_v8  ;;  %1913 = vmatpush3.bf16.msra.mxu1 %v1929_v8 }
  0x26   : > { %1835 = vmatmul.mubr.bf16.vlgmr.msra.gmra.mrb[0].mxu0 %v1931_v10  ;;  %1867 = vmatmul.mubr.bf16.vlgmr.msra.gmra.mrb[0].mxu1 %v1947_v12 }
  0x27   : > { %1838 = vmatprep.mubr.bf16.mxu0 %v1932_v11  ;;  %1870 = vmatprep.mubr.bf16.mxu1 %v1948_v13 }
  0x2e   : > { %1839 = vmatmul.mubr.bf16.gmra.mrb[4].mxu0 %v1933_v14  ;;  %1871 = vmatmul.mubr.bf16.gmra.mrb[4].mxu1 %v1949_v16 }
  0x2f   : > { %1842 = vmatprep.mubr.bf16.mxu0 %v1934_v15  ;;  %1874 = vmatprep.mubr.bf16.mxu1 %v1950_v17 }
  0x36   : > { %1843 = vmatmul.mubr.bf16.gmra.mrb[8].mxu0 %v1935_v18  ;;  %1875 = vmatmul.mubr.bf16.gmra.mrb[8].mxu1 %v1951_v19 }
  0x37   : > { %1846 = vmatprep.mubr.bf16.mxu0 %v1936_v20  ;;  %1878 = vmatprep.mubr.bf16.mxu1 %v1952_v21 }
  0x3e   : > { %1847 = vmatmul.mubr.bf16.gmra.mrb[12].mxu0 %v1937_v22  ;;  %1879 = vmatmul.mubr.bf16.gmra.mrb[12].mxu1 %v1953_v23 }
  0x3f   : > { %1850 = vmatprep.mubr.bf16.mxu0 %v1938_v24  ;;  %1882 = vmatprep.mubr.bf16.mxu1 %v1954_v25 }
  0x46   : > { %1851 = vmatmul.mubr.bf16.gmra.mrb[16].mxu0 %v1939_v26  ;;  %1883 = vmatmul.mubr.bf16.gmra.mrb[16].mxu1 %v1955_v27 }
  0x47   : > { %1854 = vmatprep.mubr.bf16.mxu0 %v1940_v28  ;;  %1886 = vmatprep.mubr.bf16.mxu1 %v1956_v29 }
  0x4e   : > { %1855 = vmatmul.mubr.bf16.gmra.mrb[20].mxu0 %v1941_v30  ;;  %1887 = vmatmul.mubr.bf16.gmra.mrb[20].mxu1 %v1957_v31 }
  0x4f   : > { %1858 = vmatprep.mubr.bf16.mxu0 %v1942_v32  ;;  %1890 = vmatprep.mubr.bf16.mxu1 %v1958_v33 }
  0x56   : > { %1859 = vmatmul.mubr.bf16.gmra.mrb[24].mxu0 %v1943_v34  ;;  %1891 = vmatmul.mubr.bf16.gmra.mrb[24].mxu1 %v1959_v35 }
  0x57   : > { %1862 = vmatprep.mubr.bf16.mxu0 %v1944_v36  ;;  %1894 = vmatprep.mubr.bf16.mxu1 %v1960_v37 }
  0x5e   : > { %1863 = vmatmul.mubr.bf16.gmra.mrb[28].mxu0 %v1945_v38  ;;  %1895 = vmatmul.mubr.bf16.gmra.mrb[28].mxu1 %v1961_v39 }
  0xf9   : > { %v1836_v40 = vpop.f32.mrb[0].mxu0  ;;  %v2067_v41 = vpop.f32.mrb[0].mxu1 }
  0xfa   : > { %v540_v42 = vpop.f32.mrb[1].mxu0  ;;  %v2069_v43 = vpop.f32.mrb[1].mxu1  ;;  %v1186_v55 = vmul.f32 %v1836_v40, %v1836_v40 }
  0xfb   : > { %v1837_v44 = vpop.f32.mrb[2].mxu0  ;;  %v2078_v45 = vpop.f32.mrb[2].mxu1  ;;  %v1184_v46 = vmul.f32 %v540_v42, %v540_v42 }
  0xfc   : > { %v1595_v47 = vpack.c.bf16 %v1837_v44, %v1836_v40  ;;  %v543_v48 = vpop.f32.mrb[3].mxu0  ;;  %v1675_v49 = vpack.c.bf16 %v2078_v45, %v2067_v41  ;;  %v2082_v50 = vpop.f32.mrb[3].mxu1  ;;  %v1187_v58 = vmul.f32 %v1837_v44, %v1837_v44 }
  0xfd   : > { %v1590_v51 = vpack.c.bf16 %v543_v48, %v540_v42  ;;  %v1115_v52 = vadd.f32 %v543_v48, %v540_v42  ;;  %v1185_v53 = vmul.f32 %v543_v48, %v543_v48  ;;  %v1670_v54 = vpack.c.bf16 %v2082_v50, %v2069_v43 }
  0xfe   : > { %1747 = vst [vmem:[%s2076_s10 + $0x8] sm:$0xff] %v1595_v47   ;;  %1763 = vst [vmem:[%s2076_s10 + $0x88] sm:$0xff] %v1675_v49  }
  0xff   : > { %1591 = vst [vmem:[%s2076_s10] sm:$0xff] %v1590_v51   ;;  %v1116_v56 = vadd.f32 %v1836_v40, %v1115_v52  ;;  %v1248_v57 = vadd.f32 %v1185_v53, %v1184_v46  ;;  %1762 = vst [vmem:[%s2076_s10 + $0x80] sm:$0xff] %v1670_v54  }
 0x101   : > { %v1249_v59 = vadd.f32 %v1248_v57, %v1186_v55  ;;  %v1840_v60 = vpop.f32.mrb[4].mxu0  ;;  %v1117_v61 = vadd.f32 %v1837_v44, %v1116_v56  ;;  %v2090_v62 = vpop.f32.mrb[4].mxu1 }
 0x102   : > { %v556_v63 = vpop.f32.mrb[5].mxu0  ;;  %v2092_v0 = vpop.f32.mrb[5].mxu1  ;;  %v1190_v15 = vmul.f32 %v1840_v60, %v1840_v60 }
 0x103   : > { %v1118_v1 = vadd.f32 %v1117_v61, %v556_v63  ;;  %v1188_v2 = vmul.f32 %v556_v63, %v556_v63  ;;  %v1250_v3 = vadd.f32 %v1249_v59, %v1187_v58  ;;  %v1841_v4 = vpop.f32.mrb[6].mxu0  ;;  %v2094_v5 = vpop.f32.mrb[6].mxu1 }
 0x104   : > { %v1605_v6 = vpack.c.bf16 %v1841_v4, %v1840_v60  ;;  %v559_v7 = vpop.f32.mrb[7].mxu0  ;;  %v1685_v8 = vpack.c.bf16 %v2094_v5, %v2090_v62  ;;  %v2098_v9 = vpop.f32.mrb[7].mxu1  ;;  %v1191_v18 = vmul.f32 %v1841_v4, %v1841_v4 }
 0x105   : > { %v1251_v10 = vadd.f32 %v1250_v3, %v1188_v2  ;;  %v1600_v11 = vpack.c.bf16 %v559_v7, %v556_v63  ;;  %v1119_v12 = vadd.f32 %v1118_v1, %v559_v7  ;;  %v1189_v13 = vmul.f32 %v559_v7, %v559_v7 }
 0x106   : > { %1749 = vst [vmem:[%s2076_s10 + $0x18] sm:$0xff] %v1605_v6   ;;  %1765 = vst [vmem:[%s2076_s10 + $0x98] sm:$0xff] %v1685_v8   ;;  %v1680_v14 = vpack.c.bf16 %v2098_v9, %v2092_v0 }
 0x107   : > { %1748 = vst [vmem:[%s2076_s10 + $0x10] sm:$0xff] %v1600_v11   ;;  %v1120_v16 = vadd.f32 %v1840_v60, %v1119_v12  ;;  %v1252_v17 = vadd.f32 %v1251_v10, %v1189_v13 }
 0x108   : > { %1764 = vst [vmem:[%s2076_s10 + $0x90] sm:$0xff] %v1680_v14  }
 0x109   : > { %v1253_v19 = vadd.f32 %v1252_v17, %v1190_v15  ;;  %v1844_v20 = vpop.f32.mrb[8].mxu0  ;;  %v1121_v21 = vadd.f32 %v1841_v4, %v1120_v16  ;;  %v2106_v22 = vpop.f32.mrb[8].mxu1 }
 0x10a   : > { %v572_v23 = vpop.f32.mrb[9].mxu0  ;;  %v2108_v24 = vpop.f32.mrb[9].mxu1  ;;  %v1194_v39 = vmul.f32 %v1844_v20, %v1844_v20 }
 0x10b   : > { %v1122_v25 = vadd.f32 %v1121_v21, %v572_v23  ;;  %v1192_v26 = vmul.f32 %v572_v23, %v572_v23  ;;  %v1254_v27 = vadd.f32 %v1253_v19, %v1191_v18  ;;  %v1845_v28 = vpop.f32.mrb[10].mxu0  ;;  %v2110_v29 = vpop.f32.mrb[10].mxu1 }
 0x10c   : > { %v1615_v30 = vpack.c.bf16 %v1845_v28, %v1844_v20  ;;  %v575_v31 = vpop.f32.mrb[11].mxu0  ;;  %v1695_v32 = vpack.c.bf16 %v2110_v29, %v2106_v22  ;;  %v2114_v33 = vpop.f32.mrb[11].mxu1  ;;  %v1195_v44 = vmul.f32 %v1845_v28, %v1845_v28 }
 0x10d   : > { %v1255_v34 = vadd.f32 %v1254_v27, %v1192_v26  ;;  %v1610_v35 = vpack.c.bf16 %v575_v31, %v572_v23  ;;  %v1123_v36 = vadd.f32 %v1122_v25, %v575_v31  ;;  %v1193_v37 = vmul.f32 %v575_v31, %v575_v31 }
 0x10e   : > { %1751 = vst [vmem:[%s2076_s10 + $0x28] sm:$0xff] %v1615_v30   ;;  %1767 = vst [vmem:[%s2076_s10 + $0xa8] sm:$0xff] %v1695_v32   ;;  %v1690_v38 = vpack.c.bf16 %v2114_v33, %v2108_v24 }
 0x10f   : > { %1750 = vst [vmem:[%s2076_s10 + $0x20] sm:$0xff] %v1610_v35   ;;  %v1124_v40 = vadd.f32 %v1844_v20, %v1123_v36  ;;  %v1256_v42 = vadd.f32 %v1255_v34, %v1193_v37 }
 0x110   : > { %1766 = vst [vmem:[%s2076_s10 + $0xa0] sm:$0xff] %v1690_v38  }
 0x111   : > { %v1257_v46 = vadd.f32 %v1256_v42, %v1194_v39  ;;  %v1848_v47 = vpop.f32.mrb[12].mxu0  ;;  %v1125_v48 = vadd.f32 %v1845_v28, %v1124_v40  ;;  %v2122_v49 = vpop.f32.mrb[12].mxu1 }
 0x112   : > { %v588_v51 = vpop.f32.mrb[13].mxu0  ;;  %v2124_v52 = vpop.f32.mrb[13].mxu1  ;;  %v1198_v6 = vmul.f32 %v1848_v47, %v1848_v47 }
 0x113   : > { %v1126_v53 = vadd.f32 %v1125_v48, %v588_v51  ;;  %v1196_v54 = vmul.f32 %v588_v51, %v588_v51  ;;  %v1258_v55 = vadd.f32 %v1257_v46, %v1195_v44  ;;  %v1849_v56 = vpop.f32.mrb[14].mxu0  ;;  %v2126_v57 = vpop.f32.mrb[14].mxu1 }
 0x114   : > { %v1625_v58 = vpack.c.bf16 %v1849_v56, %v1848_v47  ;;  %v591_v59 = vpop.f32.mrb[15].mxu0  ;;  %v1705_v60 = vpack.c.bf16 %v2126_v57, %v2122_v49  ;;  %v2130_v61 = vpop.f32.mrb[15].mxu1  ;;  %v1199_v10 = vmul.f32 %v1849_v56, %v1849_v56 }
 0x115   : > { %v1259_v63 = vadd.f32 %v1258_v55, %v1196_v54  ;;  %v1620_v1 = vpack.c.bf16 %v591_v59, %v588_v51  ;;  %v1127_v2 = vadd.f32 %v1126_v53, %v591_v59  ;;  %v1197_v3 = vmul.f32 %v591_v59, %v591_v59 }
 0x116   : > { %1753 = vst [vmem:[%s2076_s10 + $0x38] sm:$0xff] %v1625_v58   ;;  %1769 = vst [vmem:[%s2076_s10 + $0xb8] sm:$0xff] %v1705_v60   ;;  %v1700_v4 = vpack.c.bf16 %v2130_v61, %v2124_v52 }
 0x117   : > { %1752 = vst [vmem:[%s2076_s10 + $0x30] sm:$0xff] %v1620_v1   ;;  %v1128_v7 = vadd.f32 %v1848_v47, %v1127_v2  ;;  %v1260_v8 = vadd.f32 %v1259_v63, %v1197_v3 }
 0x118   : > { %1768 = vst [vmem:[%s2076_s10 + $0xb0] sm:$0xff] %v1700_v4  }
 0x119   : > { %v1261_v11 = vadd.f32 %v1260_v8, %v1198_v6  ;;  %v1852_v12 = vpop.f32.mrb[16].mxu0  ;;  %v1129_v13 = vadd.f32 %v1849_v56, %v1128_v7  ;;  %v2138_v14 = vpop.f32.mrb[16].mxu1 }
 0x11a   : > { %v604_v15 = vpop.f32.mrb[17].mxu0  ;;  %v2140_v16 = vpop.f32.mrb[17].mxu1  ;;  %v1202_v35 = vmul.f32 %v1852_v12, %v1852_v12 }
 0x11b   : > { %v1130_v17 = vadd.f32 %v1129_v13, %v604_v15  ;;  %v1200_v18 = vmul.f32 %v604_v15, %v604_v15  ;;  %v1262_v19 = vadd.f32 %v1261_v11, %v1199_v10  ;;  %v1853_v20 = vpop.f32.mrb[18].mxu0  ;;  %v2142_v21 = vpop.f32.mrb[18].mxu1 }
 0x11c   : > { %v1635_v23 = vpack.c.bf16 %v1853_v20, %v1852_v12  ;;  %v607_v25 = vpop.f32.mrb[19].mxu0  ;;  %v1715_v26 = vpack.c.bf16 %v2142_v21, %v2138_v14  ;;  %v2146_v27 = vpop.f32.mrb[19].mxu1  ;;  %v1203_v38 = vmul.f32 %v1853_v20, %v1853_v20 }
 0x11d   : > { %v1263_v28 = vadd.f32 %v1262_v19, %v1200_v18  ;;  %v1630_v30 = vpack.c.bf16 %v607_v25, %v604_v15  ;;  %v1131_v31 = vadd.f32 %v1130_v17, %v607_v25  ;;  %v1201_v32 = vmul.f32 %v607_v25, %v607_v25 }
 0x11e   : > { %1755 = vst [vmem:[%s2076_s10 + $0x48] sm:$0xff] %v1635_v23   ;;  %1771 = vst [vmem:[%s2076_s10 + $0xc8] sm:$0xff] %v1715_v26   ;;  %v1710_v34 = vpack.c.bf16 %v2146_v27, %v2140_v16 }
 0x11f   : > { %1754 = vst [vmem:[%s2076_s10 + $0x40] sm:$0xff] %v1630_v30   ;;  %v1132_v36 = vadd.f32 %v1852_v12, %v1131_v31  ;;  %v1264_v37 = vadd.f32 %v1263_v28, %v1201_v32 }
 0x120   : > { %1770 = vst [vmem:[%s2076_s10 + $0xc0] sm:$0xff] %v1710_v34  }
 0x121   : > { %v1265_v39 = vadd.f32 %v1264_v37, %v1202_v35  ;;  %v1856_v40 = vpop.f32.mrb[20].mxu0  ;;  %v1133_v42 = vadd.f32 %v1853_v20, %v1132_v36  ;;  %v2154_v44 = vpop.f32.mrb[20].mxu1 }
 0x122   : > { %v620_v46 = vpop.f32.mrb[21].mxu0  ;;  %v2156_v47 = vpop.f32.mrb[21].mxu1  ;;  %v1206_v6 = vmul.f32 %v1856_v40, %v1856_v40 }
 0x123   : > { %v1134_v48 = vadd.f32 %v1133_v42, %v620_v46  ;;  %v1204_v51 = vmul.f32 %v620_v46, %v620_v46  ;;  %v1266_v53 = vadd.f32 %v1265_v39, %v1203_v38  ;;  %v1857_v54 = vpop.f32.mrb[22].mxu0  ;;  %v2158_v55 = vpop.f32.mrb[22].mxu1 }
 0x124   : > { %v1645_v56 = vpack.c.bf16 %v1857_v54, %v1856_v40  ;;  %v623_v58 = vpop.f32.mrb[23].mxu0  ;;  %v1725_v59 = vpack.c.bf16 %v2158_v55, %v2154_v44  ;;  %v2162_v60 = vpop.f32.mrb[23].mxu1  ;;  %v1207_v10 = vmul.f32 %v1857_v54, %v1857_v54 }
 0x125   : > { %v1267_v63 = vadd.f32 %v1266_v53, %v1204_v51  ;;  %v1640_v1 = vpack.c.bf16 %v623_v58, %v620_v46  ;;  %v1135_v2 = vadd.f32 %v1134_v48, %v623_v58  ;;  %v1205_v3 = vmul.f32 %v623_v58, %v623_v58 }
 0x126   : > { %1757 = vst [vmem:[%s2076_s10 + $0x58] sm:$0xff] %v1645_v56   ;;  %1773 = vst [vmem:[%s2076_s10 + $0xd8] sm:$0xff] %v1725_v59   ;;  %v1720_v4 = vpack.c.bf16 %v2162_v60, %v2156_v47 }
 0x127   : > { %1756 = vst [vmem:[%s2076_s10 + $0x50] sm:$0xff] %v1640_v1   ;;  %v1136_v7 = vadd.f32 %v1856_v40, %v1135_v2  ;;  %v1268_v8 = vadd.f32 %v1267_v63, %v1205_v3 }
 0x128   : > { %1772 = vst [vmem:[%s2076_s10 + $0xd0] sm:$0xff] %v1720_v4  }
 0x129   : > { %v1269_v11 = vadd.f32 %v1268_v8, %v1206_v6  ;;  %v1860_v12 = vpop.f32.mrb[24].mxu0  ;;  %v1137_v13 = vadd.f32 %v1857_v54, %v1136_v7  ;;  %v2170_v15 = vpop.f32.mrb[24].mxu1 }
 0x12a   : > { %v636_v17 = vpop.f32.mrb[25].mxu0  ;;  %v2172_v18 = vpop.f32.mrb[25].mxu1  ;;  %v1210_v39 = vmul.f32 %v1860_v12, %v1860_v12 }
 0x12b   : > { %v1138_v19 = vadd.f32 %v1137_v13, %v636_v17  ;;  %v1208_v20 = vmul.f32 %v636_v17, %v636_v17  ;;  %v1270_v23 = vadd.f32 %v1269_v11, %v1207_v10  ;;  %v1861_v25 = vpop.f32.mrb[26].mxu0  ;;  %v2174_v26 = vpop.f32.mrb[26].mxu1 }
 0x12c   : > { %v1655_v28 = vpack.c.bf16 %v1861_v25, %v1860_v12  ;;  %v639_v30 = vpop.f32.mrb[27].mxu0  ;;  %v1735_v31 = vpack.c.bf16 %v2174_v26, %v2170_v15  ;;  %v2178_v32 = vpop.f32.mrb[27].mxu1  ;;  %v1211_v46 = vmul.f32 %v1861_v25, %v1861_v25 }
 0x12d   : > { %v1271_v34 = vadd.f32 %v1270_v23, %v1208_v20  ;;  %v1650_v35 = vpack.c.bf16 %v639_v30, %v636_v17  ;;  %v1139_v36 = vadd.f32 %v1138_v19, %v639_v30  ;;  %v1209_v37 = vmul.f32 %v639_v30, %v639_v30 }
 0x12e   : > { %1759 = vst [vmem:[%s2076_s10 + $0x68] sm:$0xff] %v1655_v28   ;;  %1775 = vst [vmem:[%s2076_s10 + $0xe8] sm:$0xff] %v1735_v31   ;;  %v1730_v38 = vpack.c.bf16 %v2178_v32, %v2172_v18  ;;  %v1216_v31 = vmul.f32 %v2069_v43, %v2069_v43 }
 0x12f   : > { %1758 = vst [vmem:[%s2076_s10 + $0x60] sm:$0xff] %v1650_v35   ;;  %v1140_v40 = vadd.f32 %v1860_v12, %v1139_v36  ;;  %v1272_v42 = vadd.f32 %v1271_v34, %v1209_v37 }
 0x130   : > { %1774 = vst [vmem:[%s2076_s10 + $0xe0] sm:$0xff] %v1730_v38   ;;  %v1217_v38 = vmul.f32 %v2082_v50, %v2082_v50 }
 0x131   : > { %v1273_v48 = vadd.f32 %v1272_v42, %v1210_v39  ;;  %v1864_v51 = vpop.f32.mrb[28].mxu0  ;;  %v1141_v53 = vadd.f32 %v1861_v25, %v1140_v40  ;;  %v2186_v54 = vpop.f32.mrb[28].mxu1  ;;  %v1218_v39 = vmul.f32 %v2067_v41, %v2067_v41 }
 0x132   : > { %v652_v56 = vpop.f32.mrb[29].mxu0  ;;  %v2188_v58 = vpop.f32.mrb[29].mxu1  ;;  %v1214_v19 = vmul.f32 %v1864_v51, %v1864_v51 }
 0x133   : > { %v1142_v59 = vadd.f32 %v1141_v53, %v652_v56  ;;  %v1212_v63 = vmul.f32 %v652_v56, %v652_v56  ;;  %v1274_v1 = vadd.f32 %v1273_v48, %v1211_v46  ;;  %v1865_v2 = vpop.f32.mrb[30].mxu0  ;;  %v2190_v3 = vpop.f32.mrb[30].mxu1  ;;  %v1219_v46 = vmul.f32 %v2078_v45, %v2078_v45 }
 0x134   : > { %v1665_v4 = vpack.c.bf16 %v1865_v2, %v1864_v51  ;;  %v655_v6 = vpop.f32.mrb[31].mxu0  ;;  %v1745_v7 = vpack.c.bf16 %v2190_v3, %v2186_v54  ;;  %v2194_v8 = vpop.f32.mrb[31].mxu1  ;;  %v1215_v25 = vmul.f32 %v1865_v2, %v1865_v2 }
 0x135   : > { %v1275_v10 = vadd.f32 %v1274_v1, %v1212_v63  ;;  %v1660_v11 = vpack.c.bf16 %v655_v6, %v652_v56  ;;  %v1143_v12 = vadd.f32 %v1142_v59, %v655_v6  ;;  %v1213_v13 = vmul.f32 %v655_v6, %v655_v6 }
 0x136   : > { %1761 = vst [vmem:[%s2076_s10 + $0x78] sm:$0xff] %v1665_v4   ;;  %1777 = vst [vmem:[%s2076_s10 + $0xf8] sm:$0xff] %v1745_v7   ;;  %v1740_v17 = vpack.c.bf16 %v2194_v8, %v2188_v58  ;;  %v1221_v63 = vmul.f32 %v2098_v9, %v2098_v9 }
 0x137   : > { %1760 = vst [vmem:[%s2076_s10 + $0x70] sm:$0xff] %v1660_v11   ;;  %v1144_v20 = vadd.f32 %v1864_v51, %v1143_v12  ;;  %v1276_v23 = vadd.f32 %v1275_v10, %v1213_v13  ;;  %v1225_v12 = vmul.f32 %v2114_v33, %v2114_v33 }
 0x138   : > { %1776 = vst [vmem:[%s2076_s10 + $0xf0] sm:$0xff] %v1740_v17  }
 0x139   : > { %v1277_v28 = vadd.f32 %v1276_v23, %v1214_v19  ;;  %v1145_v30 = vadd.f32 %v1865_v2, %v1144_v20 }
 0x13b   : > { %v1146_v34 = vadd.f32 %v1145_v30, %v2069_v43  ;;  %v1278_v35 = vadd.f32 %v1277_v28, %v1215_v25  ;;  %v1220_v43 = vmul.f32 %v2092_v0, %v2092_v0  ;;  %v1229_v30 = vmul.f32 %v2130_v61, %v2130_v61 }
 0x13d   : > { %v1279_v36 = vadd.f32 %v1278_v35, %v1216_v31  ;;  %v1147_v37 = vadd.f32 %v1146_v34, %v2082_v50 }
 0x13f   : > { %v1148_v40 = vadd.f32 %v2067_v41, %v1147_v37  ;;  %v1280_v42 = vadd.f32 %v1279_v36, %v1217_v38  ;;  %v1222_v41 = vmul.f32 %v2090_v62, %v2090_v62 }
 0x141   : > { %v1281_v48 = vadd.f32 %v1280_v42, %v1218_v39  ;;  %v1149_v51 = vadd.f32 %v2078_v45, %v1148_v40  ;;  %v1223_v45 = vmul.f32 %v2094_v5, %v2094_v5  ;;  %v1233_v40 = vmul.f32 %v2146_v27, %v2146_v27 }
 0x143   : > { %v1150_v53 = vadd.f32 %v1149_v51, %v2092_v0  ;;  %v1282_v56 = vadd.f32 %v1281_v48, %v1219_v46  ;;  %v1224_v0 = vmul.f32 %v2108_v24, %v2108_v24 }
 0x145   : > { %v1283_v59 = vadd.f32 %v1282_v56, %v1220_v43  ;;  %v1151_v50 = vadd.f32 %v1150_v53, %v2098_v9 }
 0x147   : > { %v1152_v1 = vadd.f32 %v2090_v62, %v1151_v50  ;;  %v1284_v2 = vadd.f32 %v1283_v59, %v1221_v63  ;;  %v1226_v62 = vmul.f32 %v2106_v22, %v2106_v22  ;;  %v1237_v59 = vmul.f32 %v2162_v60, %v2162_v60 }
 0x149   : > { %v1285_v4 = vadd.f32 %v1284_v2, %v1222_v41  ;;  %v1153_v6 = vadd.f32 %v2094_v5, %v1152_v1  ;;  %v1227_v5 = vmul.f32 %v2110_v29, %v2110_v29 }
 0x14b   : > { %v1154_v7 = vadd.f32 %v1153_v6, %v2108_v24  ;;  %v1286_v10 = vadd.f32 %v1285_v4, %v1223_v45  ;;  %v1228_v24 = vmul.f32 %v2124_v52, %v2124_v52  ;;  %v1241_v6 = vmul.f32 %v2178_v32, %v2178_v32 }
 0x14d   : > { %v1287_v11 = vadd.f32 %v1286_v10, %v1224_v0  ;;  %v1155_v9 = vadd.f32 %v1154_v7, %v2114_v33 }
 0x14f   : > { %v1156_v13 = vadd.f32 %v2106_v22, %v1155_v9  ;;  %v1288_v17 = vadd.f32 %v1287_v11, %v1225_v12  ;;  %v1230_v22 = vmul.f32 %v2122_v49, %v2122_v49  ;;  %v1244_v11 = vmul.f32 %v2188_v58, %v2188_v58 }
 0x151   : > { %v1289_v19 = vadd.f32 %v1288_v17, %v1226_v62  ;;  %v1157_v20 = vadd.f32 %v2110_v29, %v1156_v13  ;;  %v1231_v29 = vmul.f32 %v2126_v57, %v2126_v57  ;;  %v1246_v13 = vmul.f32 %v2186_v54, %v2186_v54 }
 0x153   : > { %v1158_v23 = vadd.f32 %v1157_v20, %v2124_v52  ;;  %v1290_v25 = vadd.f32 %v1289_v19, %v1227_v5  ;;  %v1232_v52 = vmul.f32 %v2140_v16, %v2140_v16 }
 0x155   : > { %v1291_v28 = vadd.f32 %v1290_v25, %v1228_v24  ;;  %v1159_v33 = vadd.f32 %v1158_v23, %v2130_v61 }
 0x157   : > { %v1160_v31 = vadd.f32 %v2122_v49, %v1159_v33  ;;  %v1292_v34 = vadd.f32 %v1291_v28, %v1229_v30  ;;  %v1234_v49 = vmul.f32 %v2138_v14, %v2138_v14 }
 0x159   : > { %v1293_v35 = vadd.f32 %v1292_v34, %v1230_v22  ;;  %v1161_v36 = vadd.f32 %v2126_v57, %v1160_v31  ;;  %v1235_v57 = vmul.f32 %v2142_v21, %v2142_v21 }
 0x15b   : > { %v1162_v37 = vadd.f32 %v1161_v36, %v2140_v16  ;;  %v1294_v38 = vadd.f32 %v1293_v35, %v1231_v29  ;;  %v1236_v16 = vmul.f32 %v2156_v47, %v2156_v47 }
 0x15d   : > { %v1295_v39 = vadd.f32 %v1294_v38, %v1232_v52  ;;  %v1163_v61 = vadd.f32 %v1162_v37, %v2146_v27 }
 0x15f   : > { %v1164_v42 = vadd.f32 %v2138_v14, %v1163_v61  ;;  %v1296_v46 = vadd.f32 %v1295_v39, %v1233_v40  ;;  %v1238_v14 = vmul.f32 %v2154_v44, %v2154_v44 }
 0x161   : > { %v1297_v48 = vadd.f32 %v1296_v46, %v1234_v49  ;;  %v1165_v51 = vadd.f32 %v2142_v21, %v1164_v42  ;;  %v1239_v21 = vmul.f32 %v2158_v55, %v2158_v55 }
 0x163   : > { %v1166_v43 = vadd.f32 %v1165_v51, %v2156_v47  ;;  %v1298_v53 = vadd.f32 %v1297_v48, %v1235_v57  ;;  %v1240_v47 = vmul.f32 %v2172_v18, %v2172_v18 }
 0x165   : > { %v1299_v56 = vadd.f32 %v1298_v53, %v1236_v16  ;;  %v1167_v27 = vadd.f32 %v1166_v43, %v2162_v60 }
 0x167   : > { %v1168_v50 = vadd.f32 %v2154_v44, %v1167_v27  ;;  %v1300_v63 = vadd.f32 %v1299_v56, %v1237_v59  ;;  %v1242_v44 = vmul.f32 %v2170_v15, %v2170_v15 }
 0x169   : > { %v1301_v41 = vadd.f32 %v1300_v63, %v1238_v14  ;;  %v1169_v1 = vadd.f32 %v2158_v55, %v1168_v50  ;;  %v1243_v55 = vmul.f32 %v2174_v26, %v2174_v26 }
 0x16b   : > { %v1170_v2 = vadd.f32 %v1169_v1, %v2172_v18  ;;  %v1302_v45 = vadd.f32 %v1301_v41, %v1239_v21 }
 0x16d   : > { %v1303_v4 = vadd.f32 %v1302_v45, %v1240_v47  ;;  %v1171_v60 = vadd.f32 %v1170_v2, %v2178_v32 }
 0x16f   : > { %v1172_v0 = vadd.f32 %v2170_v15, %v1171_v60  ;;  %v1304_v7 = vadd.f32 %v1303_v4, %v1241_v6  ;;  %v1245_v15 = vmul.f32 %v2194_v8, %v2194_v8 }
 0x171   : > { %v1305_v10 = vadd.f32 %v1304_v7, %v1242_v44  ;;  %v1173_v18 = vadd.f32 %v2174_v26, %v1172_v0  ;;  %v1247_v26 = vmul.f32 %v2190_v3, %v2190_v3 }
 0x173   : > { %v1174_v9 = vadd.f32 %v1173_v18, %v2188_v58  ;;  %v1306_v12 = vadd.f32 %v1305_v10, %v1243_v55 }
 0x175   : > { %v1307_v32 = vadd.f32 %v1306_v12, %v1244_v11  ;;  %v1175_v62 = vadd.f32 %v1174_v9, %v2194_v8 }
 0x177   : > { %v1176_v17 = vadd.f32 %v2186_v54, %v1175_v62  ;;  %v1308_v5 = vadd.f32 %v1307_v32, %v1245_v15 }
 0x179   : > { %v1177_v19 = vadd.f32 %v2190_v3, %v1176_v17  ;;  %v1309_v58 = vadd.f32 %v1308_v5, %v1246_v13 }
 0x17b   : > { %v1178_v20 = vrot.slane %v1177_v19, 4  ;;  %v1310_v24 = vadd.f32 %v1309_v58, %v1247_v26 }
 0x17d   : > { %v1179_v23 = vadd.f32 %v1178_v20, %v1177_v19  ;;  %v1311_v25 = vrot.slane %v1310_v24, 4 }
 0x17f   : > { %v1180_v28 = vrot.slane %v1179_v23, 2  ;;  %v1312_v33 = vadd.f32 %v1311_v25, %v1310_v24 }
 0x181   : > { %v1181_v8 = vadd.f32 %v1180_v28, %v1179_v23  ;;  %v1313_v30 = vrot.slane %v1312_v33, 2 }
 0x183   : > { %v1182_v22 = vrot.slane %v1181_v8, 1  ;;  %v1314_v31 = vadd.f32 %v1313_v30, %v1312_v33 }
 0x185   : > { %v1315_v54 = vrot.slane %v1314_v31, 1  ;;  %v1183_v3 = vadd.f32 %v1182_v22, %v1181_v8 }
 0x187   : > { %v1316_v34 = vadd.f32 %v1315_v54, %v1314_v31 }
 0x189   : > { %v1318_v29 = vsel %vm1317_vm0, %v1183_v3, %v1316_v34 }
 0x18a   : > { %1319 = vst [vmem:[%s184_s16] sm:$0x3] %v1318_v29 }
 0x18b PF: > { %s14_s12 = sadd.s32 1, %s1968_s12  }
 0x18c   : > { %p11_p5 = scmp.ge.s32.totalorder %s14_s12, 4  }
 0x18e   :  { %13 = sbr.rel (!%p11_p5) target bundleno = 1 (0x1), region = 70 }

// kernel: inconv_forward.5
= control target key start
LH: loop header
LB: loop body
LE: loop exit
PB: predicated region body
PF: predicated region fallthrough
CT: control target
= control target key end

     0   :  { %s1411_s12 = smov 0   ;;  %s1741_s0 = inlined_call_operand.vmem [shape: bf16[1024,128], index: 0, kind: input, shape index: {}, may-alias: {0,3}]   ;;  %s1742_s1 = inlined_call_operand.vmem [shape: f32[1,128], index: 1, kind: input, shape index: {}]   ;;  %s1743_s2 = inlined_call_operand.vmem [shape: f32[1,128], index: 2, kind: input, shape index: {}]   ;;  %s1744_s3 = inlined_call_operand.vmem [shape: bf16[1024,128], index: 3, kind: output, shape index: {}, may-alias: {0,3}]  }
   0x1 LB: > { %s884_s13 = sadd.s32 4294967295, %s1389_s12   ;;  %p888_p0 = scmp.ge.s32.totalorder %s1389_s12, 1  ;;  %s1389_s12 = sphi %s1411_s12, %s13_s12  }
   0x2   : > { %p138_p1 = scmp.lt.s32.totalorder %s1389_s12, 3 }
   0x4   : > { %p139_p2 = pnand %p888_p0, %p138_p1 }
   0x5   : > { %s889_s14 = sshll.u32 (!%p139_p2), %s884_s13, 6  ;;  %v1432_v0 = vld [vmem:[%s1742_s1] ss:$0 sm:$0xff] (!%p139_p2) }
   0x6   : > { %142 = sbr.rel (%p139_p2) target bundleno = 95 (0x5f), region = 32  ;;  %p163_p3 = scmp.lt.s32.totalorder (!%p139_p2), %s889_s14, 127  ;;  %v1441_v9 = vld [vmem:[%s1743_s2] ss:$0 sm:$0xff] (!%p139_p2) }
   0xd   : > { %s1746_s14 = smov (!%p163_p3, %s889_s14), 127 }
   0xe   : > { %s890_s15 = sshll.u32 %s1746_s14, 2 }
   0xf   : > { %s1427_s18 = scalar_lea.vmem %s1741_s0, %s890_s15  ;;  %s1470_s25 = scalar_lea.vmem %s1744_s3, %s890_s15 }
  0x10   : > { %v1026_v1 = vld [vmem:[%s1427_s18] sm:$0xff]   ;;  %v1313_v2 = vld [vmem:[%s1427_s18 + $0x8] sm:$0xff]   ;;  %v1314_v3 = vld [vmem:[%s1427_s18 + $0x10] sm:$0xff]  }
  0x11   : > { %v1027_v4 = vunpack.c.l.bf16 %v1026_v1  ;;  %v1028_v5 = vunpack.c.h.bf16 %v1026_v1  ;;  %v1315_v6 = vld [vmem:[%s1427_s18 + $0x18] sm:$0xff]   ;;  %v1031_v7 = vunpack.c.l.bf16 %v1313_v2  ;;  %v1032_v8 = vunpack.c.h.bf16 %v1313_v2  ;;  %v1316_v18 = vld [vmem:[%s1427_s18 + $0x20] sm:$0xff]   ;;  %v1317_v31 = vld [vmem:[%s1427_s18 + $0x28] sm:$0xff]  }
  0x12   : > { %v1035_v10 = vunpack.c.l.bf16 %v1314_v3  ;;  %v1036_v11 = vunpack.c.h.bf16 %v1314_v3  ;;  %v1039_v12 = vunpack.c.l.bf16 %v1315_v6  ;;  %v1040_v13 = vunpack.c.h.bf16 %v1315_v6  ;;  %v1318_v32 = vld [vmem:[%s1427_s18 + $0x30] sm:$0xff]   ;;  %v1463_v33 = vld [vmem:[%s1427_s18 + $0x38] sm:$0xff]   ;;  %v1473_v38 = vld [vmem:[%s1427_s18 + $0x40] sm:$0xff]  }
  0x13   : > { %v309_v14 = vmul.f32 %v1027_v4, %v1432_v0  ;;  %v310_v15 = vmul.f32 %v1028_v5, %v1432_v0  ;;  %v311_v16 = vmul.f32 %v1031_v7, %v1432_v0  ;;  %v312_v17 = vmul.f32 %v1032_v8, %v1432_v0  ;;  %v1476_v39 = vld [vmem:[%s1427_s18 + $0x48] sm:$0xff]   ;;  %v1479_v40 = vld [vmem:[%s1427_s18 + $0x50] sm:$0xff]   ;;  %v1482_v41 = vld [vmem:[%s1427_s18 + $0x58] sm:$0xff]  }
  0x14   : > { %v313_v19 = vmul.f32 %v1035_v10, %v1432_v0  ;;  %v314_v20 = vmul.f32 %v1036_v11, %v1432_v0  ;;  %v315_v21 = vmul.f32 %v1039_v12, %v1432_v0  ;;  %v316_v22 = vmul.f32 %v1040_v13, %v1432_v0  ;;  %v1485_v42 = vld [vmem:[%s1427_s18 + $0x60] sm:$0xff]   ;;  %v1488_v43 = vld [vmem:[%s1427_s18 + $0x68] sm:$0xff]   ;;  %v1491_v44 = vld [vmem:[%s1427_s18 + $0x70] sm:$0xff]  }
  0x15   : > { %v380_v23 = vadd.f32 %v1441_v9, %v309_v14  ;;  %v381_v24 = vadd.f32 %v1441_v9, %v310_v15  ;;  %v382_v25 = vadd.f32 %v1441_v9, %v311_v16  ;;  %v383_v26 = vadd.f32 %v1441_v9, %v312_v17  ;;  %v1494_v45 = vld [vmem:[%s1427_s18 + $0x78] sm:$0xff]   ;;  %v1497_v46 = vld [vmem:[%s1427_s18 + $0x80] sm:$0xff]   ;;  %v1500_v47 = vld [vmem:[%s1427_s18 + $0x88] sm:$0xff]  }
  0x16   : > { %v384_v27 = vadd.f32 %v1441_v9, %v313_v19  ;;  %v385_v28 = vadd.f32 %v1441_v9, %v314_v20  ;;  %v386_v29 = vadd.f32 %v1441_v9, %v315_v21  ;;  %v387_v30 = vadd.f32 %v1441_v9, %v316_v22  ;;  %v1503_v48 = vld [vmem:[%s1427_s18 + $0x90] sm:$0xff]   ;;  %v1506_v49 = vld [vmem:[%s1427_s18 + $0x98] sm:$0xff]   ;;  %v1509_v50 = vld [vmem:[%s1427_s18 + $0xa0] sm:$0xff]  }
  0x17   : > { %v444_v34 = vmax.f32 %v380_v23, 0.0  ;;  %v445_v35 = vmax.f32 %v381_v24, 0.0  ;;  %v446_v36 = vmax.f32 %v382_v25, 0.0  ;;  %v1043_v37 = vunpack.c.l.bf16 %v1316_v18  ;;  %v1512_v51 = vld [vmem:[%s1427_s18 + $0xa8] sm:$0xff]   ;;  %v1515_v52 = vld [vmem:[%s1427_s18 + $0xb0] sm:$0xff]   ;;  %v1518_v53 = vld [vmem:[%s1427_s18 + $0xb8] sm:$0xff]  }
  0x18   : > { %v1521_v54 = vld [vmem:[%s1427_s18 + $0xc0] sm:$0xff]   ;;  %v1524_v55 = vld [vmem:[%s1427_s18 + $0xc8] sm:$0xff]   ;;  %v447_v56 = vmax.f32 %v383_v26, 0.0  ;;  %v448_v57 = vmax.f32 %v384_v27, 0.0  ;;  %v449_v58 = vmax.f32 %v385_v28, 0.0  ;;  %v1044_v59 = vunpack.c.h.bf16 %v1316_v18  ;;  %v1527_v60 = vld [vmem:[%s1427_s18 + $0xd0] sm:$0xff]  }
  0x19   : > { %v1530_v61 = vld [vmem:[%s1427_s18 + $0xd8] sm:$0xff]   ;;  %v1533_v62 = vld [vmem:[%s1427_s18 + $0xe0] sm:$0xff]   ;;  %v1156_v63 = vpack.c.bf16 %v445_v35, %v444_v34  ;;  %v450_v1 = vmax.f32 %v386_v29, 0.0  ;;  %v451_v2 = vmax.f32 %v387_v30, 0.0  ;;  %v317_v3 = vmul.f32 %v1043_v37, %v1432_v0  ;;  %v1537_v4 = vld [vmem:[%s1427_s18 + $0xe8] sm:$0xff]  }
  0x1a   : > { %v1540_v5 = vld [vmem:[%s1427_s18 + $0xf0] sm:$0xff]   ;;  %v1543_v6 = vld [vmem:[%s1427_s18 + $0xf8] sm:$0xff]   ;;  %v1161_v7 = vpack.c.bf16 %v447_v56, %v446_v36  ;;  %v1166_v8 = vpack.c.bf16 %v449_v58, %v448_v57  ;;  %v318_v10 = vmul.f32 %v1044_v59, %v1432_v0  ;;  %v1047_v11 = vunpack.c.l.bf16 %v1317_v31 }
  0x1b   : > { %1157 = vst [vmem:[%s1470_s25] sm:$0xff] %v1156_v63   ;;  %v1171_v12 = vpack.c.bf16 %v451_v2, %v450_v1  ;;  %v388_v13 = vadd.f32 %v1441_v9, %v317_v3  ;;  %v1048_v14 = vunpack.c.h.bf16 %v1317_v31  ;;  %v1051_v15 = vunpack.c.l.bf16 %v1318_v32 }
  0x1c   : > { %1344 = vst [vmem:[%s1470_s25 + $0x8] sm:$0xff] %v1161_v7   ;;  %1345 = vst [vmem:[%s1470_s25 + $0x10] sm:$0xff] %v1166_v8   ;;  %v389_v16 = vadd.f32 %v1441_v9, %v318_v10  ;;  %v319_v17 = vmul.f32 %v1047_v11, %v1432_v0  ;;  %v1052_v18 = vunpack.c.h.bf16 %v1318_v32  ;;  %v1055_v19 = vunpack.c.l.bf16 %v1463_v33 }
  0x1d   : > { %1346 = vst [vmem:[%s1470_s25 + $0x18] sm:$0xff] %v1171_v12   ;;  %v452_v20 = vmax.f32 %v388_v13, 0.0  ;;  %v320_v21 = vmul.f32 %v1048_v14, %v1432_v0  ;;  %v321_v22 = vmul.f32 %v1051_v15, %v1432_v0  ;;  %v1056_v23 = vunpack.c.h.bf16 %v1463_v33 }
  0x1e   : > { %v453_v24 = vmax.f32 %v389_v16, 0.0  ;;  %v390_v25 = vadd.f32 %v1441_v9, %v319_v17  ;;  %v322_v26 = vmul.f32 %v1052_v18, %v1432_v0  ;;  %v323_v27 = vmul.f32 %v1055_v19, %v1432_v0 }
  0x1f   : > { %v391_v28 = vadd.f32 %v1441_v9, %v320_v21  ;;  %v392_v29 = vadd.f32 %v1441_v9, %v321_v22  ;;  %v324_v30 = vmul.f32 %v1056_v23, %v1432_v0  ;;  %v1059_v31 = vunpack.c.l.bf16 %v1473_v38 }
  0x20   : > { %v1176_v32 = vpack.c.bf16 %v453_v24, %v452_v20  ;;  %v454_v34 = vmax.f32 %v390_v25, 0.0  ;;  %v393_v33 = vadd.f32 %v1441_v9, %v322_v26  ;;  %v394_v35 = vadd.f32 %v1441_v9, %v323_v27 }
  0x21   : > { %v455_v36 = vmax.f32 %v391_v28, 0.0  ;;  %v456_v37 = vmax.f32 %v392_v29, 0.0  ;;  %v395_v56 = vadd.f32 %v1441_v9, %v324_v30  ;;  %v1060_v57 = vunpack.c.h.bf16 %v1473_v38 }
  0x22   : > { %1347 = vst [vmem:[%s1470_s25 + $0x20] sm:$0xff] %v1176_v32   ;;  %v457_v58 = vmax.f32 %v393_v33, 0.0  ;;  %v458_v59 = vmax.f32 %v394_v35, 0.0  ;;  %v325_v63 = vmul.f32 %v1059_v31, %v1432_v0  ;;  %v1063_v1 = vunpack.c.l.bf16 %v1476_v39 }
  0x23   : > { %v1181_v2 = vpack.c.bf16 %v455_v36, %v454_v34  ;;  %v459_v3 = vmax.f32 %v395_v56, 0.0  ;;  %v326_v7 = vmul.f32 %v1060_v57, %v1432_v0  ;;  %v1064_v8 = vunpack.c.h.bf16 %v1476_v39 }
  0x24   : > { %v1186_v10 = vpack.c.bf16 %v457_v58, %v456_v37  ;;  %v396_v11 = vadd.f32 %v1441_v9, %v325_v63  ;;  %v327_v38 = vmul.f32 %v1063_v1, %v1432_v0  ;;  %v1067_v12 = vunpack.c.l.bf16 %v1479_v40 }
  0x25   : > { %1348 = vst [vmem:[%s1470_s25 + $0x28] sm:$0xff] %v1181_v2   ;;  %v1191_v13 = vpack.c.bf16 %v459_v3, %v458_v59  ;;  %v397_v14 = vadd.f32 %v1441_v9, %v326_v7  ;;  %v328_v15 = vmul.f32 %v1064_v8, %v1432_v0  ;;  %v1068_v16 = vunpack.c.h.bf16 %v1479_v40 }
  0x26   : > { %1349 = vst [vmem:[%s1470_s25 + $0x30] sm:$0xff] %v1186_v10   ;;  %v460_v17 = vmax.f32 %v396_v11, 0.0  ;;  %v398_v18 = vadd.f32 %v1441_v9, %v327_v38  ;;  %v329_v39 = vmul.f32 %v1067_v12, %v1432_v0  ;;  %v1071_v19 = vunpack.c.l.bf16 %v1482_v41 }
  0x27   : > { %1350 = vst [vmem:[%s1470_s25 + $0x38] sm:$0xff] %v1191_v13   ;;  %v461_v20 = vmax.f32 %v397_v14, 0.0  ;;  %v399_v21 = vadd.f32 %v1441_v9, %v328_v15  ;;  %v330_v22 = vmul.f32 %v1068_v16, %v1432_v0  ;;  %v1072_v23 = vunpack.c.h.bf16 %v1482_v41 }
  0x28   : > { %v462_v24 = vmax.f32 %v398_v18, 0.0  ;;  %v400_v40 = vadd.f32 %v1441_v9, %v329_v39  ;;  %v331_v25 = vmul.f32 %v1071_v19, %v1432_v0  ;;  %v1075_v26 = vunpack.c.l.bf16 %v1485_v42 }
  0x29   : > { %v1196_v27 = vpack.c.bf16 %v461_v20, %v460_v17  ;;  %v463_v28 = vmax.f32 %v399_v21, 0.0  ;;  %v401_v29 = vadd.f32 %v1441_v9, %v330_v22  ;;  %v332_v30 = vmul.f32 %v1072_v23, %v1432_v0 }
  0x2a   : > { %v464_v31 = vmax.f32 %v400_v40, 0.0  ;;  %v402_v32 = vadd.f32 %v1441_v9, %v331_v25  ;;  %v1076_v34 = vunpack.c.h.bf16 %v1485_v42  ;;  %v333_v41 = vmul.f32 %v1075_v26, %v1432_v0 }
  0x2b   : > { %1351 = vst [vmem:[%s1470_s25 + $0x40] sm:$0xff] %v1196_v27   ;;  %v1201_v33 = vpack.c.bf16 %v463_v28, %v462_v24  ;;  %v465_v35 = vmax.f32 %v401_v29, 0.0  ;;  %v403_v36 = vadd.f32 %v1441_v9, %v332_v30  ;;  %v1079_v37 = vunpack.c.l.bf16 %v1488_v43 }
  0x2c   : > { %v466_v56 = vmax.f32 %v402_v32, 0.0  ;;  %v334_v57 = vmul.f32 %v1076_v34, %v1432_v0  ;;  %v404_v58 = vadd.f32 %v1441_v9, %v333_v41  ;;  %v1080_v59 = vunpack.c.h.bf16 %v1488_v43 }
  0x2d   : > { %1352 = vst [vmem:[%s1470_s25 + $0x48] sm:$0xff] %v1201_v33   ;;  %v1206_v63 = vpack.c.bf16 %v465_v35, %v464_v31  ;;  %v467_v42 = vmax.f32 %v403_v36, 0.0  ;;  %v335_v1 = vmul.f32 %v1079_v37, %v1432_v0  ;;  %v1083_v2 = vunpack.c.l.bf16 %v1491_v44 }
  0x2e   : > { %v405_v3 = vadd.f32 %v1441_v9, %v334_v57  ;;  %v468_v7 = vmax.f32 %v404_v58, 0.0  ;;  %v336_v8 = vmul.f32 %v1080_v59, %v1432_v0  ;;  %v1084_v10 = vunpack.c.h.bf16 %v1491_v44 }
  0x2f   : > { %1353 = vst [vmem:[%s1470_s25 + $0x50] sm:$0xff] %v1206_v63   ;;  %v1211_v11 = vpack.c.bf16 %v467_v42, %v466_v56  ;;  %v406_v38 = vadd.f32 %v1441_v9, %v335_v1  ;;  %v337_v43 = vmul.f32 %v1083_v2, %v1432_v0  ;;  %v1087_v12 = vunpack.c.l.bf16 %v1494_v45 }
  0x30   : > { %v469_v13 = vmax.f32 %v405_v3, 0.0  ;;  %v407_v14 = vadd.f32 %v1441_v9, %v336_v8  ;;  %v338_v15 = vmul.f32 %v1084_v10, %v1432_v0  ;;  %v1088_v16 = vunpack.c.h.bf16 %v1494_v45 }
  0x31   : > { %1354 = vst [vmem:[%s1470_s25 + $0x58] sm:$0xff] %v1211_v11   ;;  %v470_v17 = vmax.f32 %v406_v38, 0.0  ;;  %v408_v44 = vadd.f32 %v1441_v9, %v337_v43  ;;  %v339_v18 = vmul.f32 %v1087_v12, %v1432_v0  ;;  %v1091_v39 = vunpack.c.l.bf16 %v1497_v46 }
  0x32   : > { %v1216_v19 = vpack.c.bf16 %v469_v13, %v468_v7  ;;  %v471_v20 = vmax.f32 %v407_v14, 0.0  ;;  %v409_v21 = vadd.f32 %v1441_v9, %v338_v15  ;;  %v340_v22 = vmul.f32 %v1088_v16, %v1432_v0 }
  0x33   : > { %v472_v23 = vmax.f32 %v408_v44, 0.0  ;;  %v410_v24 = vadd.f32 %v1441_v9, %v339_v18  ;;  %v1092_v45 = vunpack.c.h.bf16 %v1497_v46  ;;  %v341_v40 = vmul.f32 %v1091_v39, %v1432_v0 }
  0x34   : > { %1355 = vst [vmem:[%s1470_s25 + $0x60] sm:$0xff] %v1216_v19   ;;  %v1221_v25 = vpack.c.bf16 %v471_v20, %v470_v17  ;;  %v473_v26 = vmax.f32 %v409_v21, 0.0  ;;  %v411_v27 = vadd.f32 %v1441_v9, %v340_v22  ;;  %v1095_v28 = vunpack.c.l.bf16 %v1500_v47 }
  0x35   : > { %v474_v29 = vmax.f32 %v410_v24, 0.0  ;;  %v342_v30 = vmul.f32 %v1092_v45, %v1432_v0  ;;  %v412_v31 = vadd.f32 %v1441_v9, %v341_v40  ;;  %v1096_v32 = vunpack.c.h.bf16 %v1500_v47 }
  0x36   : > { %1356 = vst [vmem:[%s1470_s25 + $0x68] sm:$0xff] %v1221_v25   ;;  %v1226_v34 = vpack.c.bf16 %v473_v26, %v472_v23  ;;  %v475_v46 = vmax.f32 %v411_v27, 0.0  ;;  %v343_v41 = vmul.f32 %v1095_v28, %v1432_v0  ;;  %v1099_v33 = vunpack.c.l.bf16 %v1503_v48 }
  0x37   : > { %v413_v35 = vadd.f32 %v1441_v9, %v342_v30  ;;  %v476_v36 = vmax.f32 %v412_v31, 0.0  ;;  %v344_v37 = vmul.f32 %v1096_v32, %v1432_v0  ;;  %v1100_v56 = vunpack.c.h.bf16 %v1503_v48 }
  0x38   : > { %1357 = vst [vmem:[%s1470_s25 + $0x70] sm:$0xff] %v1226_v34   ;;  %v1231_v57 = vpack.c.bf16 %v475_v46, %v474_v29  ;;  %v414_v58 = vadd.f32 %v1441_v9, %v343_v41  ;;  %v345_v47 = vmul.f32 %v1099_v33, %v1432_v0  ;;  %v1103_v59 = vunpack.c.l.bf16 %v1506_v49 }
  0x39   : > { %v477_v63 = vmax.f32 %v413_v35, 0.0  ;;  %v415_v42 = vadd.f32 %v1441_v9, %v344_v37  ;;  %v346_v1 = vmul.f32 %v1100_v56, %v1432_v0  ;;  %v1104_v2 = vunpack.c.h.bf16 %v1506_v49 }
  0x3a   : > { %1358 = vst [vmem:[%s1470_s25 + $0x78] sm:$0xff] %v1231_v57   ;;  %v478_v3 = vmax.f32 %v414_v58, 0.0  ;;  %v416_v48 = vadd.f32 %v1441_v9, %v345_v47  ;;  %v347_v7 = vmul.f32 %v1103_v59, %v1432_v0  ;;  %v1107_v8 = vunpack.c.l.bf16 %v1509_v50 }
  0x3b   : > { %v1236_v10 = vpack.c.bf16 %v477_v63, %v476_v36  ;;  %v479_v11 = vmax.f32 %v415_v42, 0.0  ;;  %v417_v38 = vadd.f32 %v1441_v9, %v346_v1  ;;  %v348_v43 = vmul.f32 %v1104_v2, %v1432_v0 }
  0x3c   : > { %v480_v12 = vmax.f32 %v416_v48, 0.0  ;;  %v418_v13 = vadd.f32 %v1441_v9, %v347_v7  ;;  %v1108_v49 = vunpack.c.h.bf16 %v1509_v50  ;;  %v349_v14 = vmul.f32 %v1107_v8, %v1432_v0 }
  0x3d   : > { %1359 = vst [vmem:[%s1470_s25 + $0x80] sm:$0xff] %v1236_v10   ;;  %v1241_v15 = vpack.c.bf16 %v479_v11, %v478_v3  ;;  %v481_v16 = vmax.f32 %v417_v38, 0.0  ;;  %v419_v17 = vadd.f32 %v1441_v9, %v348_v43  ;;  %v1111_v44 = vunpack.c.l.bf16 %v1512_v51 }
  0x3e   : > { %v482_v18 = vmax.f32 %v418_v13, 0.0  ;;  %v350_v39 = vmul.f32 %v1108_v49, %v1432_v0  ;;  %v420_v19 = vadd.f32 %v1441_v9, %v349_v14  ;;  %v1112_v20 = vunpack.c.h.bf16 %v1512_v51 }
  0x3f   : > { %1360 = vst [vmem:[%s1470_s25 + $0x88] sm:$0xff] %v1241_v15   ;;  %v1246_v21 = vpack.c.bf16 %v481_v16, %v480_v12  ;;  %v483_v50 = vmax.f32 %v419_v17, 0.0  ;;  %v351_v22 = vmul.f32 %v1111_v44, %v1432_v0  ;;  %v1115_v23 = vunpack.c.l.bf16 %v1515_v52 }
  0x40   : > { %v421_v24 = vadd.f32 %v1441_v9, %v350_v39  ;;  %v484_v45 = vmax.f32 %v420_v19, 0.0  ;;  %v352_v40 = vmul.f32 %v1112_v20, %v1432_v0  ;;  %v1116_v25 = vunpack.c.h.bf16 %v1515_v52 }
  0x41   : > { %1361 = vst [vmem:[%s1470_s25 + $0x90] sm:$0xff] %v1246_v21   ;;  %v1251_v26 = vpack.c.bf16 %v483_v50, %v482_v18  ;;  %v422_v27 = vadd.f32 %v1441_v9, %v351_v22  ;;  %v353_v51 = vmul.f32 %v1115_v23, %v1432_v0  ;;  %v1119_v28 = vunpack.c.l.bf16 %v1518_v53 }
  0x42   : > { %v485_v29 = vmax.f32 %v421_v24, 0.0  ;;  %v423_v30 = vadd.f32 %v1441_v9, %v352_v40  ;;  %v354_v31 = vmul.f32 %v1116_v25, %v1432_v0  ;;  %v1120_v32 = vunpack.c.h.bf16 %v1518_v53 }
  0x43   : > { %1362 = vst [vmem:[%s1470_s25 + $0x98] sm:$0xff] %v1251_v26   ;;  %v486_v34 = vmax.f32 %v422_v27, 0.0  ;;  %v424_v52 = vadd.f32 %v1441_v9, %v353_v51  ;;  %v355_v46 = vmul.f32 %v1119_v28, %v1432_v0  ;;  %v1123_v41 = vunpack.c.l.bf16 %v1521_v54 }
  0x44   : > { %v1256_v33 = vpack.c.bf16 %v485_v29, %v484_v45  ;;  %v487_v35 = vmax.f32 %v423_v30, 0.0  ;;  %v425_v36 = vadd.f32 %v1441_v9, %v354_v31  ;;  %v356_v37 = vmul.f32 %v1120_v32, %v1432_v0 }
  0x45   : > { %v488_v56 = vmax.f32 %v424_v52, 0.0  ;;  %v426_v57 = vadd.f32 %v1441_v9, %v355_v46  ;;  %v1124_v53 = vunpack.c.h.bf16 %v1521_v54  ;;  %v357_v58 = vmul.f32 %v1123_v41, %v1432_v0 }
  0x46   : > { %1363 = vst [vmem:[%s1470_s25 + $0xa0] sm:$0xff] %v1256_v33   ;;  %v1261_v47 = vpack.c.bf16 %v487_v35, %v486_v34  ;;  %v489_v59 = vmax.f32 %v425_v36, 0.0  ;;  %v427_v63 = vadd.f32 %v1441_v9, %v356_v37  ;;  %v1127_v42 = vunpack.c.l.bf16 %v1524_v55 }
  0x47   : > { %v490_v1 = vmax.f32 %v426_v57, 0.0  ;;  %v358_v2 = vmul.f32 %v1124_v53, %v1432_v0  ;;  %v428_v3 = vadd.f32 %v1441_v9, %v357_v58  ;;  %v1128_v48 = vunpack.c.h.bf16 %v1524_v55 }
  0x48   : > { %1364 = vst [vmem:[%s1470_s25 + $0xa8] sm:$0xff] %v1261_v47   ;;  %v1266_v7 = vpack.c.bf16 %v489_v59, %v488_v56  ;;  %v491_v54 = vmax.f32 %v427_v63, 0.0  ;;  %v359_v8 = vmul.f32 %v1127_v42, %v1432_v0  ;;  %v1131_v10 = vunpack.c.l.bf16 %v1527_v60 }
  0x49   : > { %v429_v11 = vadd.f32 %v1441_v9, %v358_v2  ;;  %v492_v38 = vmax.f32 %v428_v3, 0.0  ;;  %v360_v43 = vmul.f32 %v1128_v48, %v1432_v0  ;;  %v1132_v12 = vunpack.c.h.bf16 %v1527_v60 }
  0x4a   : > { %1365 = vst [vmem:[%s1470_s25 + $0xb0] sm:$0xff] %v1266_v7   ;;  %v1271_v13 = vpack.c.bf16 %v491_v54, %v490_v1  ;;  %v430_v49 = vadd.f32 %v1441_v9, %v359_v8  ;;  %v361_v55 = vmul.f32 %v1131_v10, %v1432_v0  ;;  %v1135_v14 = vunpack.c.l.bf16 %v1530_v61 }
  0x4b   : > { %v493_v15 = vmax.f32 %v429_v11, 0.0  ;;  %v431_v16 = vadd.f32 %v1441_v9, %v360_v43  ;;  %v362_v17 = vmul.f32 %v1132_v12, %v1432_v0  ;;  %v1136_v44 = vunpack.c.h.bf16 %v1530_v61 }
  0x4c   : > { %1366 = vst [vmem:[%s1470_s25 + $0xb8] sm:$0xff] %v1271_v13   ;;  %v494_v18 = vmax.f32 %v430_v49, 0.0  ;;  %v432_v60 = vadd.f32 %v1441_v9, %v361_v55  ;;  %v363_v39 = vmul.f32 %v1135_v14, %v1432_v0  ;;  %v1139_v19 = vunpack.c.l.bf16 %v1533_v62 }
  0x4d   : > { %v1276_v20 = vpack.c.bf16 %v493_v15, %v492_v38  ;;  %v495_v21 = vmax.f32 %v431_v16, 0.0  ;;  %v433_v50 = vadd.f32 %v1441_v9, %v362_v17  ;;  %v364_v22 = vmul.f32 %v1136_v44, %v1432_v0 }
  0x4e   : > { %v496_v23 = vmax.f32 %v432_v60, 0.0  ;;  %v434_v24 = vadd.f32 %v1441_v9, %v363_v39  ;;  %v1140_v61 = vunpack.c.h.bf16 %v1533_v62  ;;  %v365_v45 = vmul.f32 %v1139_v19, %v1432_v0 }
  0x4f   : > { %1367 = vst [vmem:[%s1470_s25 + $0xc0] sm:$0xff] %v1276_v20   ;;  %v1281_v40 = vpack.c.bf16 %v495_v21, %v494_v18  ;;  %v497_v25 = vmax.f32 %v433_v50, 0.0  ;;  %v435_v26 = vadd.f32 %v1441_v9, %v364_v22  ;;  %v1143_v27 = vunpack.c.l.bf16 %v1537_v4 }
  0x50   : > { %v498_v51 = vmax.f32 %v434_v24, 0.0  ;;  %v366_v28 = vmul.f32 %v1140_v61, %v1432_v0  ;;  %v436_v29 = vadd.f32 %v1441_v9, %v365_v45  ;;  %v1144_v30 = vunpack.c.h.bf16 %v1537_v4 }
  0x51   : > { %1368 = vst [vmem:[%s1470_s25 + $0xc8] sm:$0xff] %v1281_v40   ;;  %v1286_v31 = vpack.c.bf16 %v497_v25, %v496_v23  ;;  %v499_v62 = vmax.f32 %v435_v26, 0.0  ;;  %v367_v32 = vmul.f32 %v1143_v27, %v1432_v0  ;;  %v1147_v34 = vunpack.c.l.bf16 %v1540_v5 }
  0x52   : > { %v437_v52 = vadd.f32 %v1441_v9, %v366_v28  ;;  %v500_v46 = vmax.f32 %v436_v29, 0.0  ;;  %v368_v41 = vmul.f32 %v1144_v30, %v1432_v0  ;;  %v1148_v33 = vunpack.c.h.bf16 %v1540_v5 }
  0x53   : > { %1369 = vst [vmem:[%s1470_s25 + $0xd0] sm:$0xff] %v1286_v31   ;;  %v1291_v35 = vpack.c.bf16 %v499_v62, %v498_v51  ;;  %v438_v36 = vadd.f32 %v1441_v9, %v367_v32  ;;  %v369_v4 = vmul.f32 %v1147_v34, %v1432_v0  ;;  %v1151_v37 = vunpack.c.l.bf16 %v1543_v6 }
  0x54   : > { %v501_v56 = vmax.f32 %v437_v52, 0.0  ;;  %v439_v57 = vadd.f32 %v1441_v9, %v368_v41  ;;  %v370_v53 = vmul.f32 %v1148_v33, %v1432_v0  ;;  %v1152_v58 = vunpack.c.h.bf16 %v1543_v6 }
  0x55   : > { %1370 = vst [vmem:[%s1470_s25 + $0xd8] sm:$0xff] %v1291_v35   ;;  %v502_v47 = vmax.f32 %v438_v36, 0.0  ;;  %v440_v5 = vadd.f32 %v1441_v9, %v369_v4  ;;  %v371_v59 = vmul.f32 %v1151_v37, %v1432_v0 }
  0x56   : > { %v1296_v63 = vpack.c.bf16 %v501_v56, %v500_v46  ;;  %v503_v42 = vmax.f32 %v439_v57, 0.0  ;;  %v441_v1 = vadd.f32 %v1441_v9, %v370_v53  ;;  %v372_v2 = vmul.f32 %v1152_v58, %v1432_v0 }
  0x57   : > { %v504_v3 = vmax.f32 %v440_v5, 0.0  ;;  %v442_v48 = vadd.f32 %v1441_v9, %v371_v59 }
  0x58   : > { %1371 = vst [vmem:[%s1470_s25 + $0xe0] sm:$0xff] %v1296_v63   ;;  %v1301_v6 = vpack.c.bf16 %v503_v42, %v502_v47  ;;  %v505_v7 = vmax.f32 %v441_v1, 0.0  ;;  %v443_v54 = vadd.f32 %v1441_v9, %v372_v2 }
  0x59   : > { %v506_v8 = vmax.f32 %v442_v48, 0.0 }
  0x5a   : > { %1372 = vst [vmem:[%s1470_s25 + $0xe8] sm:$0xff] %v1301_v6   ;;  %v1306_v10 = vpack.c.bf16 %v505_v7, %v504_v3  ;;  %v507_v11 = vmax.f32 %v443_v54, 0.0 }
  0x5c   : > { %1373 = vst [vmem:[%s1470_s25 + $0xf0] sm:$0xff] %v1306_v10   ;;  %v1311_v38 = vpack.c.bf16 %v507_v11, %v506_v8 }
  0x5e   : > { %1374 = vst [vmem:[%s1470_s25 + $0xf8] sm:$0xff] %v1311_v38  }
  0x5f PF: > { %s13_s12 = sadd.s32 1, %s1389_s12  }
  0x60   : > { %p10_p4 = scmp.ge.s32.totalorder %s13_s12, 4  }
  0x62   :  { %12 = sbr.rel (!%p10_p4) target bundleno = 1 (0x1), region = 62 }

// kernel: inconv_forward.7
= control target key start
LH: loop header
LB: loop body
LE: loop exit
PB: predicated region body
PF: predicated region fallthrough
CT: control target
= control target key end

     0   :  { %s836_s12 = smov 0   ;;  %s1095_s0 = inlined_call_operand.vmem [shape: bf16[1024,128], index: 0, kind: input, shape index: {}]   ;;  %s1096_s1 = inlined_call_operand.vmem [shape: f32[1,128], index: 1, kind: input, shape index: {}]   ;;  %s1097_s2 = inlined_call_operand.vmem [shape: f32[1,128], index: 2, kind: input, shape index: {}]   ;;  %s1098_s3 = inlined_call_operand.vmem [shape: f32[1024,128], index: 3, kind: output, shape index: {}]  }
   0x1 LB: > { %s628_s13 = sadd.s32 4294967295, %s814_s12   ;;  %p632_p0 = scmp.ge.s32.totalorder %s814_s12, 1  ;;  %s814_s12 = sphi %s836_s12, %s13_s12  }
   0x2   : > { %p138_p1 = scmp.lt.s32.totalorder %s814_s12, 3 }
   0x4   : > { %p139_p2 = pnand %p632_p0, %p138_p1 }
   0x5   : > { %s633_s14 = sshll.u32 (!%p139_p2), %s628_s13, 6  ;;  %v855_v0 = vld [vmem:[%s1096_s1] ss:$0 sm:$0xff] (!%p139_p2) }
   0x6   : > { %142 = sbr.rel (%p139_p2) target bundleno = 85 (0x55), region = 32  ;;  %p163_p3 = scmp.lt.s32.totalorder (!%p139_p2), %s633_s14, 127  ;;  %v864_v9 = vld [vmem:[%s1097_s2] ss:$0 sm:$0xff] (!%p139_p2) }
   0xd   : > { %s1100_s14 = smov (!%p163_p3, %s633_s14), 127 }
   0xe   : > { %s634_s15 = sshll.u32 %s1100_s14, 2  ;;  %s636_s23 = sshll.u32 %s1100_s14, 3 }
   0xf   : > { %s850_s18 = scalar_lea.vmem %s1095_s0, %s634_s15  ;;  %s882_s26 = scalar_lea.vmem %s1098_s3, %s636_s23 }
  0x10   : > { %v642_v1 = vld [vmem:[%s850_s18] sm:$0xff]   ;;  %v769_v2 = vld [vmem:[%s850_s18 + $0x8] sm:$0xff]   ;;  %v770_v3 = vld [vmem:[%s850_s18 + $0x10] sm:$0xff]  }
  0x11   : > { %v643_v4 = vunpack.c.l.bf16 %v642_v1  ;;  %v644_v5 = vunpack.c.h.bf16 %v642_v1  ;;  %v647_v6 = vunpack.c.l.bf16 %v769_v2  ;;  %v648_v7 = vunpack.c.h.bf16 %v769_v2  ;;  %v771_v8 = vld [vmem:[%s850_s18 + $0x18] sm:$0xff]   ;;  %v772_v30 = vld [vmem:[%s850_s18 + $0x20] sm:$0xff]   ;;  %v773_v31 = vld [vmem:[%s850_s18 + $0x28] sm:$0xff]  }
  0x12   : > { %v651_v10 = vunpack.c.l.bf16 %v770_v3  ;;  %v652_v11 = vunpack.c.h.bf16 %v770_v3  ;;  %v655_v12 = vunpack.c.l.bf16 %v771_v8  ;;  %v656_v13 = vunpack.c.h.bf16 %v771_v8  ;;  %v774_v36 = vld [vmem:[%s850_s18 + $0x30] sm:$0xff]   ;;  %v775_v37 = vld [vmem:[%s850_s18 + $0x38] sm:$0xff]   ;;  %v776_v3 = vld [vmem:[%s850_s18 + $0x40] sm:$0xff]  }
  0x13   : > { %v309_v14 = vmul.f32 %v643_v4, %v855_v0  ;;  %v310_v15 = vmul.f32 %v644_v5, %v855_v0  ;;  %v311_v16 = vmul.f32 %v647_v6, %v855_v0  ;;  %v312_v17 = vmul.f32 %v648_v7, %v855_v0  ;;  %v777_v4 = vld [vmem:[%s850_s18 + $0x48] sm:$0xff]  }
  0x14   : > { %v313_v18 = vmul.f32 %v651_v10, %v855_v0  ;;  %v314_v19 = vmul.f32 %v652_v11, %v855_v0  ;;  %v315_v20 = vmul.f32 %v655_v12, %v855_v0  ;;  %v316_v21 = vmul.f32 %v656_v13, %v855_v0  ;;  %v778_v10 = vld [vmem:[%s850_s18 + $0x50] sm:$0xff]   ;;  %v779_v11 = vld [vmem:[%s850_s18 + $0x58] sm:$0xff]  }
  0x15   : > { %v380_v22 = vadd.f32 %v864_v9, %v309_v14  ;;  %v381_v23 = vadd.f32 %v864_v9, %v310_v15  ;;  %v382_v24 = vadd.f32 %v864_v9, %v311_v16  ;;  %v383_v25 = vadd.f32 %v864_v9, %v312_v17 }
  0x16   : > { %v384_v26 = vadd.f32 %v864_v9, %v313_v18  ;;  %v385_v27 = vadd.f32 %v864_v9, %v314_v19  ;;  %v386_v28 = vadd.f32 %v864_v9, %v315_v20  ;;  %v387_v29 = vadd.f32 %v864_v9, %v316_v21 }
  0x17   : > { %v444_v32 = vmax.f32 %v380_v22, 0.0  ;;  %v445_v33 = vmax.f32 %v381_v23, 0.0  ;;  %v446_v34 = vmax.f32 %v382_v24, 0.0  ;;  %v447_v35 = vmax.f32 %v383_v25, 0.0 }
  0x18   : > { %v448_v38 = vmax.f32 %v384_v26, 0.0  ;;  %v449_v39 = vmax.f32 %v385_v27, 0.0  ;;  %v450_v40 = vmax.f32 %v386_v28, 0.0  ;;  %v451_v41 = vmax.f32 %v387_v29, 0.0 }
  0x19   : > { %508 = vst [vmem:[%s882_s26] sm:$0xff] %v444_v32  ;;  %509 = vst [vmem:[%s882_s26 + $0x8] sm:$0xff] %v445_v33  ;;  %v659_v42 = vunpack.c.l.bf16 %v772_v30  ;;  %v660_v43 = vunpack.c.h.bf16 %v772_v30  ;;  %v663_v44 = vunpack.c.l.bf16 %v773_v31  ;;  %v664_v45 = vunpack.c.h.bf16 %v773_v31 }
  0x1a   : > { %510 = vst [vmem:[%s882_s26 + $0x10] sm:$0xff] %v446_v34  ;;  %511 = vst [vmem:[%s882_s26 + $0x18] sm:$0xff] %v447_v35  ;;  %v667_v46 = vunpack.c.l.bf16 %v774_v36  ;;  %v668_v47 = vunpack.c.h.bf16 %v774_v36  ;;  %v671_v48 = vunpack.c.l.bf16 %v775_v37  ;;  %v672_v49 = vunpack.c.h.bf16 %v775_v37 }
  0x1b   : > { %512 = vst [vmem:[%s882_s26 + $0x20] sm:$0xff] %v448_v38  ;;  %513 = vst [vmem:[%s882_s26 + $0x28] sm:$0xff] %v449_v39  ;;  %v317_v50 = vmul.f32 %v659_v42, %v855_v0  ;;  %v318_v51 = vmul.f32 %v660_v43, %v855_v0  ;;  %v319_v52 = vmul.f32 %v663_v44, %v855_v0  ;;  %v675_v16 = vunpack.c.l.bf16 %v776_v3 }
  0x1c   : > { %514 = vst [vmem:[%s882_s26 + $0x30] sm:$0xff] %v450_v40  ;;  %515 = vst [vmem:[%s882_s26 + $0x38] sm:$0xff] %v451_v41  ;;  %v320_v53 = vmul.f32 %v664_v45, %v855_v0  ;;  %v321_v54 = vmul.f32 %v667_v46, %v855_v0  ;;  %v322_v55 = vmul.f32 %v668_v47, %v855_v0  ;;  %v676_v17 = vunpack.c.h.bf16 %v776_v3  ;;  %v780_v40 = vld [vmem:[%s850_s18 + $0x60] sm:$0xff]   ;;  %v781_v41 = vld [vmem:[%s850_s18 + $0x68] sm:$0xff]  }
  0x1d   : > { %v323_v56 = vmul.f32 %v671_v48, %v855_v0  ;;  %v324_v57 = vmul.f32 %v672_v49, %v855_v0  ;;  %v388_v58 = vadd.f32 %v864_v9, %v317_v50  ;;  %v389_v59 = vadd.f32 %v864_v9, %v318_v51  ;;  %v782_v46 = vld [vmem:[%s850_s18 + $0x70] sm:$0xff]   ;;  %v783_v47 = vld [vmem:[%s850_s18 + $0x78] sm:$0xff]  }
  0x1e   : > { %v390_v60 = vadd.f32 %v864_v9, %v319_v52  ;;  %v391_v61 = vadd.f32 %v864_v9, %v320_v53  ;;  %v392_v62 = vadd.f32 %v864_v9, %v321_v54  ;;  %v393_v63 = vadd.f32 %v864_v9, %v322_v55 }
  0x1f   : > { %v394_v1 = vadd.f32 %v864_v9, %v323_v56  ;;  %v395_v2 = vadd.f32 %v864_v9, %v324_v57  ;;  %v452_v5 = vmax.f32 %v388_v58, 0.0  ;;  %v453_v6 = vmax.f32 %v389_v59, 0.0 }
  0x20   : > { %v454_v7 = vmax.f32 %v390_v60, 0.0  ;;  %v455_v8 = vmax.f32 %v391_v61, 0.0  ;;  %v456_v12 = vmax.f32 %v392_v62, 0.0  ;;  %v457_v13 = vmax.f32 %v393_v63, 0.0 }
  0x21   : > { %v458_v14 = vmax.f32 %v394_v1, 0.0  ;;  %v459_v15 = vmax.f32 %v395_v2, 0.0  ;;  %516 = vst [vmem:[%s882_s26 + $0x40] sm:$0xff] %v452_v5  ;;  %517 = vst [vmem:[%s882_s26 + $0x48] sm:$0xff] %v453_v6  ;;  %v679_v18 = vunpack.c.l.bf16 %v777_v4  ;;  %v680_v19 = vunpack.c.h.bf16 %v777_v4 }
  0x22   : > { %518 = vst [vmem:[%s882_s26 + $0x50] sm:$0xff] %v454_v7  ;;  %519 = vst [vmem:[%s882_s26 + $0x58] sm:$0xff] %v455_v8  ;;  %v683_v20 = vunpack.c.l.bf16 %v778_v10  ;;  %v684_v21 = vunpack.c.h.bf16 %v778_v10  ;;  %v687_v22 = vunpack.c.l.bf16 %v779_v11  ;;  %v688_v23 = vunpack.c.h.bf16 %v779_v11 }
  0x23   : > { %520 = vst [vmem:[%s882_s26 + $0x60] sm:$0xff] %v456_v12  ;;  %521 = vst [vmem:[%s882_s26 + $0x68] sm:$0xff] %v457_v13  ;;  %v325_v24 = vmul.f32 %v675_v16, %v855_v0  ;;  %v326_v25 = vmul.f32 %v676_v17, %v855_v0  ;;  %v327_v26 = vmul.f32 %v679_v18, %v855_v0  ;;  %v691_v52 = vunpack.c.l.bf16 %v780_v40 }
  0x24   : > { %522 = vst [vmem:[%s882_s26 + $0x70] sm:$0xff] %v458_v14  ;;  %523 = vst [vmem:[%s882_s26 + $0x78] sm:$0xff] %v459_v15  ;;  %v328_v27 = vmul.f32 %v680_v19, %v855_v0  ;;  %v329_v28 = vmul.f32 %v683_v20, %v855_v0  ;;  %v330_v29 = vmul.f32 %v684_v21, %v855_v0  ;;  %v692_v53 = vunpack.c.h.bf16 %v780_v40  ;;  %v784_v14 = vld [vmem:[%s850_s18 + $0x80] sm:$0xff]   ;;  %v785_v15 = vld [vmem:[%s850_s18 + $0x88] sm:$0xff]  }
  0x25   : > { %v331_v30 = vmul.f32 %v687_v22, %v855_v0  ;;  %v332_v31 = vmul.f32 %v688_v23, %v855_v0  ;;  %v396_v32 = vadd.f32 %v864_v9, %v325_v24  ;;  %v397_v33 = vadd.f32 %v864_v9, %v326_v25  ;;  %v786_v20 = vld [vmem:[%s850_s18 + $0x90] sm:$0xff]   ;;  %v787_v21 = vld [vmem:[%s850_s18 + $0x98] sm:$0xff]  }
  0x26   : > { %v398_v34 = vadd.f32 %v864_v9, %v327_v26  ;;  %v399_v35 = vadd.f32 %v864_v9, %v328_v27  ;;  %v400_v36 = vadd.f32 %v864_v9, %v329_v28  ;;  %v401_v37 = vadd.f32 %v864_v9, %v330_v29 }
  0x27   : > { %v402_v38 = vadd.f32 %v864_v9, %v331_v30  ;;  %v403_v39 = vadd.f32 %v864_v9, %v332_v31  ;;  %v460_v42 = vmax.f32 %v396_v32, 0.0  ;;  %v461_v43 = vmax.f32 %v397_v33, 0.0 }
  0x28   : > { %v462_v44 = vmax.f32 %v398_v34, 0.0  ;;  %v463_v45 = vmax.f32 %v399_v35, 0.0  ;;  %v464_v48 = vmax.f32 %v400_v36, 0.0  ;;  %v465_v49 = vmax.f32 %v401_v37, 0.0 }
  0x29   : > { %v466_v50 = vmax.f32 %v402_v38, 0.0  ;;  %v467_v51 = vmax.f32 %v403_v39, 0.0  ;;  %524 = vst [vmem:[%s882_s26 + $0x80] sm:$0xff] %v460_v42  ;;  %525 = vst [vmem:[%s882_s26 + $0x88] sm:$0xff] %v461_v43  ;;  %v695_v54 = vunpack.c.l.bf16 %v781_v41  ;;  %v696_v55 = vunpack.c.h.bf16 %v781_v41 }
  0x2a   : > { %526 = vst [vmem:[%s882_s26 + $0x90] sm:$0xff] %v462_v44  ;;  %527 = vst [vmem:[%s882_s26 + $0x98] sm:$0xff] %v463_v45  ;;  %v699_v56 = vunpack.c.l.bf16 %v782_v46  ;;  %v700_v57 = vunpack.c.h.bf16 %v782_v46  ;;  %v703_v58 = vunpack.c.l.bf16 %v783_v47  ;;  %v704_v59 = vunpack.c.h.bf16 %v783_v47 }
  0x2b   : > { %528 = vst [vmem:[%s882_s26 + $0xa0] sm:$0xff] %v464_v48  ;;  %529 = vst [vmem:[%s882_s26 + $0xa8] sm:$0xff] %v465_v49  ;;  %v333_v60 = vmul.f32 %v691_v52, %v855_v0  ;;  %v334_v61 = vmul.f32 %v692_v53, %v855_v0  ;;  %v335_v62 = vmul.f32 %v695_v54, %v855_v0  ;;  %v707_v26 = vunpack.c.l.bf16 %v784_v14 }
  0x2c   : > { %530 = vst [vmem:[%s882_s26 + $0xb0] sm:$0xff] %v466_v50  ;;  %531 = vst [vmem:[%s882_s26 + $0xb8] sm:$0xff] %v467_v51  ;;  %v336_v63 = vmul.f32 %v696_v55, %v855_v0  ;;  %v337_v1 = vmul.f32 %v699_v56, %v855_v0  ;;  %v338_v2 = vmul.f32 %v700_v57, %v855_v0  ;;  %v708_v27 = vunpack.c.h.bf16 %v784_v14  ;;  %v788_v50 = vld [vmem:[%s850_s18 + $0xa0] sm:$0xff]   ;;  %v789_v51 = vld [vmem:[%s850_s18 + $0xa8] sm:$0xff]  }
  0x2d   : > { %v339_v3 = vmul.f32 %v703_v58, %v855_v0  ;;  %v340_v4 = vmul.f32 %v704_v59, %v855_v0  ;;  %v404_v5 = vadd.f32 %v864_v9, %v333_v60  ;;  %v405_v6 = vadd.f32 %v864_v9, %v334_v61  ;;  %v790_v56 = vld [vmem:[%s850_s18 + $0xb0] sm:$0xff]   ;;  %v791_v57 = vld [vmem:[%s850_s18 + $0xb8] sm:$0xff]  }
  0x2e   : > { %v406_v7 = vadd.f32 %v864_v9, %v335_v62  ;;  %v407_v8 = vadd.f32 %v864_v9, %v336_v63  ;;  %v408_v10 = vadd.f32 %v864_v9, %v337_v1  ;;  %v409_v11 = vadd.f32 %v864_v9, %v338_v2 }
  0x2f   : > { %v410_v12 = vadd.f32 %v864_v9, %v339_v3  ;;  %v411_v13 = vadd.f32 %v864_v9, %v340_v4  ;;  %v468_v16 = vmax.f32 %v404_v5, 0.0  ;;  %v469_v17 = vmax.f32 %v405_v6, 0.0 }
  0x30   : > { %v470_v18 = vmax.f32 %v406_v7, 0.0  ;;  %v471_v19 = vmax.f32 %v407_v8, 0.0  ;;  %v472_v22 = vmax.f32 %v408_v10, 0.0  ;;  %v473_v23 = vmax.f32 %v409_v11, 0.0 }
  0x31   : > { %v474_v24 = vmax.f32 %v410_v12, 0.0  ;;  %v475_v25 = vmax.f32 %v411_v13, 0.0  ;;  %532 = vst [vmem:[%s882_s26 + $0xc0] sm:$0xff] %v468_v16  ;;  %533 = vst [vmem:[%s882_s26 + $0xc8] sm:$0xff] %v469_v17  ;;  %v711_v28 = vunpack.c.l.bf16 %v785_v15  ;;  %v712_v29 = vunpack.c.h.bf16 %v785_v15 }
  0x32   : > { %534 = vst [vmem:[%s882_s26 + $0xd0] sm:$0xff] %v470_v18  ;;  %535 = vst [vmem:[%s882_s26 + $0xd8] sm:$0xff] %v471_v19  ;;  %v715_v30 = vunpack.c.l.bf16 %v786_v20  ;;  %v716_v31 = vunpack.c.h.bf16 %v786_v20  ;;  %v719_v32 = vunpack.c.l.bf16 %v787_v21  ;;  %v720_v33 = vunpack.c.h.bf16 %v787_v21 }
  0x33   : > { %536 = vst [vmem:[%s882_s26 + $0xe0] sm:$0xff] %v472_v22  ;;  %537 = vst [vmem:[%s882_s26 + $0xe8] sm:$0xff] %v473_v23  ;;  %v341_v34 = vmul.f32 %v707_v26, %v855_v0  ;;  %v342_v35 = vmul.f32 %v708_v27, %v855_v0  ;;  %v343_v36 = vmul.f32 %v711_v28, %v855_v0  ;;  %v723_v62 = vunpack.c.l.bf16 %v788_v50 }
  0x34   : > { %538 = vst [vmem:[%s882_s26 + $0xf0] sm:$0xff] %v474_v24  ;;  %539 = vst [vmem:[%s882_s26 + $0xf8] sm:$0xff] %v475_v25  ;;  %v344_v37 = vmul.f32 %v712_v29, %v855_v0  ;;  %v345_v38 = vmul.f32 %v715_v30, %v855_v0  ;;  %v346_v39 = vmul.f32 %v716_v31, %v855_v0  ;;  %v724_v63 = vunpack.c.h.bf16 %v788_v50  ;;  %v792_v24 = vld [vmem:[%s850_s18 + $0xc0] sm:$0xff]   ;;  %v793_v25 = vld [vmem:[%s850_s18 + $0xc8] sm:$0xff]  }
  0x35   : > { %v347_v40 = vmul.f32 %v719_v32, %v855_v0  ;;  %v348_v41 = vmul.f32 %v720_v33, %v855_v0  ;;  %v412_v42 = vadd.f32 %v864_v9, %v341_v34  ;;  %v413_v43 = vadd.f32 %v864_v9, %v342_v35  ;;  %v794_v30 = vld [vmem:[%s850_s18 + $0xd0] sm:$0xff]   ;;  %v795_v31 = vld [vmem:[%s850_s18 + $0xd8] sm:$0xff]  }
  0x36   : > { %v414_v44 = vadd.f32 %v864_v9, %v343_v36  ;;  %v415_v45 = vadd.f32 %v864_v9, %v344_v37  ;;  %v416_v46 = vadd.f32 %v864_v9, %v345_v38  ;;  %v417_v47 = vadd.f32 %v864_v9, %v346_v39 }
  0x37   : > { %v418_v48 = vadd.f32 %v864_v9, %v347_v40  ;;  %v419_v49 = vadd.f32 %v864_v9, %v348_v41  ;;  %v476_v52 = vmax.f32 %v412_v42, 0.0  ;;  %v477_v53 = vmax.f32 %v413_v43, 0.0 }
  0x38   : > { %v478_v54 = vmax.f32 %v414_v44, 0.0  ;;  %v479_v55 = vmax.f32 %v415_v45, 0.0  ;;  %v480_v58 = vmax.f32 %v416_v46, 0.0  ;;  %v481_v59 = vmax.f32 %v417_v47, 0.0 }
  0x39   : > { %v482_v60 = vmax.f32 %v418_v48, 0.0  ;;  %v483_v61 = vmax.f32 %v419_v49, 0.0  ;;  %540 = vst [vmem:[%s882_s26 + $0x100] sm:$0xff] %v476_v52  ;;  %541 = vst [vmem:[%s882_s26 + $0x108] sm:$0xff] %v477_v53  ;;  %v727_v1 = vunpack.c.l.bf16 %v789_v51  ;;  %v728_v2 = vunpack.c.h.bf16 %v789_v51 }
  0x3a   : > { %542 = vst [vmem:[%s882_s26 + $0x110] sm:$0xff] %v478_v54  ;;  %543 = vst [vmem:[%s882_s26 + $0x118] sm:$0xff] %v479_v55  ;;  %v731_v3 = vunpack.c.l.bf16 %v790_v56  ;;  %v732_v4 = vunpack.c.h.bf16 %v790_v56  ;;  %v735_v5 = vunpack.c.l.bf16 %v791_v57  ;;  %v736_v6 = vunpack.c.h.bf16 %v791_v57 }
  0x3b   : > { %544 = vst [vmem:[%s882_s26 + $0x120] sm:$0xff] %v480_v58  ;;  %545 = vst [vmem:[%s882_s26 + $0x128] sm:$0xff] %v481_v59  ;;  %v349_v7 = vmul.f32 %v723_v62, %v855_v0  ;;  %v350_v8 = vmul.f32 %v724_v63, %v855_v0  ;;  %v351_v10 = vmul.f32 %v727_v1, %v855_v0  ;;  %v739_v36 = vunpack.c.l.bf16 %v792_v24 }
  0x3c   : > { %546 = vst [vmem:[%s882_s26 + $0x130] sm:$0xff] %v482_v60  ;;  %547 = vst [vmem:[%s882_s26 + $0x138] sm:$0xff] %v483_v61  ;;  %v352_v11 = vmul.f32 %v728_v2, %v855_v0  ;;  %v353_v12 = vmul.f32 %v731_v3, %v855_v0  ;;  %v354_v13 = vmul.f32 %v732_v4, %v855_v0  ;;  %v740_v37 = vunpack.c.h.bf16 %v792_v24  ;;  %v796_v60 = vld [vmem:[%s850_s18 + $0xe0] sm:$0xff]   ;;  %v797_v61 = vld [vmem:[%s850_s18 + $0xe8] sm:$0xff]  }
  0x3d   : > { %v355_v14 = vmul.f32 %v735_v5, %v855_v0  ;;  %v356_v15 = vmul.f32 %v736_v6, %v855_v0  ;;  %v420_v16 = vadd.f32 %v864_v9, %v349_v7  ;;  %v421_v17 = vadd.f32 %v864_v9, %v350_v8  ;;  %v798_v3 = vld [vmem:[%s850_s18 + $0xf0] sm:$0xff]   ;;  %v799_v4 = vld [vmem:[%s850_s18 + $0xf8] sm:$0xff]  }
  0x3e   : > { %v422_v18 = vadd.f32 %v864_v9, %v351_v10  ;;  %v423_v19 = vadd.f32 %v864_v9, %v352_v11  ;;  %v424_v20 = vadd.f32 %v864_v9, %v353_v12  ;;  %v425_v21 = vadd.f32 %v864_v9, %v354_v13 }
  0x3f   : > { %v426_v22 = vadd.f32 %v864_v9, %v355_v14  ;;  %v427_v23 = vadd.f32 %v864_v9, %v356_v15  ;;  %v484_v26 = vmax.f32 %v420_v16, 0.0  ;;  %v485_v27 = vmax.f32 %v421_v17, 0.0 }
  0x40   : > { %v486_v28 = vmax.f32 %v422_v18, 0.0  ;;  %v487_v29 = vmax.f32 %v423_v19, 0.0  ;;  %v488_v32 = vmax.f32 %v424_v20, 0.0  ;;  %v489_v33 = vmax.f32 %v425_v21, 0.0 }
  0x41   : > { %v490_v34 = vmax.f32 %v426_v22, 0.0  ;;  %v491_v35 = vmax.f32 %v427_v23, 0.0  ;;  %548 = vst [vmem:[%s882_s26 + $0x140] sm:$0xff] %v484_v26  ;;  %549 = vst [vmem:[%s882_s26 + $0x148] sm:$0xff] %v485_v27  ;;  %v743_v38 = vunpack.c.l.bf16 %v793_v25  ;;  %v744_v39 = vunpack.c.h.bf16 %v793_v25 }
  0x42   : > { %550 = vst [vmem:[%s882_s26 + $0x150] sm:$0xff] %v486_v28  ;;  %551 = vst [vmem:[%s882_s26 + $0x158] sm:$0xff] %v487_v29  ;;  %v747_v40 = vunpack.c.l.bf16 %v794_v30  ;;  %v748_v41 = vunpack.c.h.bf16 %v794_v30  ;;  %v751_v42 = vunpack.c.l.bf16 %v795_v31  ;;  %v752_v43 = vunpack.c.h.bf16 %v795_v31 }
  0x43   : > { %552 = vst [vmem:[%s882_s26 + $0x160] sm:$0xff] %v488_v32  ;;  %553 = vst [vmem:[%s882_s26 + $0x168] sm:$0xff] %v489_v33  ;;  %v357_v44 = vmul.f32 %v739_v36, %v855_v0  ;;  %v358_v45 = vmul.f32 %v740_v37, %v855_v0  ;;  %v359_v46 = vmul.f32 %v743_v38, %v855_v0  ;;  %v755_v10 = vunpack.c.l.bf16 %v796_v60 }
  0x44   : > { %554 = vst [vmem:[%s882_s26 + $0x170] sm:$0xff] %v490_v34  ;;  %555 = vst [vmem:[%s882_s26 + $0x178] sm:$0xff] %v491_v35  ;;  %v360_v47 = vmul.f32 %v744_v39, %v855_v0  ;;  %v361_v48 = vmul.f32 %v747_v40, %v855_v0  ;;  %v362_v49 = vmul.f32 %v748_v41, %v855_v0  ;;  %v756_v11 = vunpack.c.h.bf16 %v796_v60 }
  0x45   : > { %v363_v50 = vmul.f32 %v751_v42, %v855_v0  ;;  %v364_v51 = vmul.f32 %v752_v43, %v855_v0  ;;  %v428_v52 = vadd.f32 %v864_v9, %v357_v44  ;;  %v429_v53 = vadd.f32 %v864_v9, %v358_v45 }
  0x46   : > { %v430_v54 = vadd.f32 %v864_v9, %v359_v46  ;;  %v431_v55 = vadd.f32 %v864_v9, %v360_v47  ;;  %v432_v56 = vadd.f32 %v864_v9, %v361_v48  ;;  %v433_v57 = vadd.f32 %v864_v9, %v362_v49 }
  0x47   : > { %v434_v58 = vadd.f32 %v864_v9, %v363_v50  ;;  %v435_v59 = vadd.f32 %v864_v9, %v364_v51  ;;  %v492_v62 = vmax.f32 %v428_v52, 0.0  ;;  %v493_v63 = vmax.f32 %v429_v53, 0.0 }
  0x48   : > { %v494_v1 = vmax.f32 %v430_v54, 0.0  ;;  %v495_v2 = vmax.f32 %v431_v55, 0.0  ;;  %v496_v5 = vmax.f32 %v432_v56, 0.0  ;;  %v497_v6 = vmax.f32 %v433_v57, 0.0 }
  0x49   : > { %v498_v7 = vmax.f32 %v434_v58, 0.0  ;;  %v499_v8 = vmax.f32 %v435_v59, 0.0  ;;  %556 = vst [vmem:[%s882_s26 + $0x180] sm:$0xff] %v492_v62  ;;  %557 = vst [vmem:[%s882_s26 + $0x188] sm:$0xff] %v493_v63  ;;  %v759_v12 = vunpack.c.l.bf16 %v797_v61  ;;  %v760_v13 = vunpack.c.h.bf16 %v797_v61 }
  0x4a   : > { %558 = vst [vmem:[%s882_s26 + $0x190] sm:$0xff] %v494_v1  ;;  %559 = vst [vmem:[%s882_s26 + $0x198] sm:$0xff] %v495_v2  ;;  %v763_v14 = vunpack.c.l.bf16 %v798_v3  ;;  %v764_v15 = vunpack.c.h.bf16 %v798_v3  ;;  %v767_v16 = vunpack.c.l.bf16 %v799_v4  ;;  %v768_v17 = vunpack.c.h.bf16 %v799_v4 }
  0x4b   : > { %560 = vst [vmem:[%s882_s26 + $0x1a0] sm:$0xff] %v496_v5  ;;  %561 = vst [vmem:[%s882_s26 + $0x1a8] sm:$0xff] %v497_v6  ;;  %v365_v18 = vmul.f32 %v755_v10, %v855_v0  ;;  %v366_v19 = vmul.f32 %v756_v11, %v855_v0  ;;  %v367_v20 = vmul.f32 %v759_v12, %v855_v0 }
  0x4c   : > { %562 = vst [vmem:[%s882_s26 + $0x1b0] sm:$0xff] %v498_v7  ;;  %563 = vst [vmem:[%s882_s26 + $0x1b8] sm:$0xff] %v499_v8  ;;  %v368_v21 = vmul.f32 %v760_v13, %v855_v0  ;;  %v369_v22 = vmul.f32 %v763_v14, %v855_v0  ;;  %v370_v23 = vmul.f32 %v764_v15, %v855_v0 }
  0x4d   : > { %v371_v24 = vmul.f32 %v767_v16, %v855_v0  ;;  %v372_v25 = vmul.f32 %v768_v17, %v855_v0  ;;  %v436_v26 = vadd.f32 %v864_v9, %v365_v18  ;;  %v437_v27 = vadd.f32 %v864_v9, %v366_v19 }
  0x4e   : > { %v438_v28 = vadd.f32 %v864_v9, %v367_v20  ;;  %v439_v29 = vadd.f32 %v864_v9, %v368_v21  ;;  %v440_v30 = vadd.f32 %v864_v9, %v369_v22  ;;  %v441_v31 = vadd.f32 %v864_v9, %v370_v23 }
  0x4f   : > { %v442_v0 = vadd.f32 %v864_v9, %v371_v24  ;;  %v443_v32 = vadd.f32 %v864_v9, %v372_v25  ;;  %v500_v33 = vmax.f32 %v436_v26, 0.0  ;;  %v501_v34 = vmax.f32 %v437_v27, 0.0 }
  0x50   : > { %v502_v35 = vmax.f32 %v438_v28, 0.0  ;;  %v503_v36 = vmax.f32 %v439_v29, 0.0  ;;  %v504_v37 = vmax.f32 %v440_v30, 0.0  ;;  %v505_v38 = vmax.f32 %v441_v31, 0.0 }
  0x51   : > { %v506_v39 = vmax.f32 %v442_v0, 0.0  ;;  %v507_v40 = vmax.f32 %v443_v32, 0.0  ;;  %564 = vst [vmem:[%s882_s26 + $0x1c0] sm:$0xff] %v500_v33  ;;  %565 = vst [vmem:[%s882_s26 + $0x1c8] sm:$0xff] %v501_v34 }
  0x52   : > { %566 = vst [vmem:[%s882_s26 + $0x1d0] sm:$0xff] %v502_v35  ;;  %567 = vst [vmem:[%s882_s26 + $0x1d8] sm:$0xff] %v503_v36 }
  0x53   : > { %568 = vst [vmem:[%s882_s26 + $0x1e0] sm:$0xff] %v504_v37  ;;  %569 = vst [vmem:[%s882_s26 + $0x1e8] sm:$0xff] %v505_v38 }
  0x54   : > { %570 = vst [vmem:[%s882_s26 + $0x1f0] sm:$0xff] %v506_v39  ;;  %571 = vst [vmem:[%s882_s26 + $0x1f8] sm:$0xff] %v507_v40 }
  0x55 PF: > { %s13_s12 = sadd.s32 1, %s814_s12  }
  0x56   : > { %p10_p4 = scmp.ge.s32.totalorder %s13_s12, 4  }
  0x58   :  { %12 = sbr.rel (!%p10_p4) target bundleno = 1 (0x1), region = 62 }

// kernel: inconv_forward.6
= control target key start
LH: loop header
LB: loop body
LE: loop exit
PB: predicated region body
PF: predicated region fallthrough
CT: control target
= control target key end

     0   :  { %s2197_s12 = smov 0   ;;  %s2598_s0 = inlined_call_operand.vmem [shape: bf16[1024,256], index: 0, kind: input, shape index: {}]   ;;  %s2599_s1 = inlined_call_operand.vmem [shape: bf16[256,128], index: 1, kind: input, shape index: {}]   ;;  %s2600_s2 = inlined_call_operand.vmem [shape: bf16[1024,128], index: 2, kind: output, shape index: {0}]   ;;  %s2601_s3 = inlined_call_operand.vmem [shape: f32[2,2,128], index: 3, kind: output, shape index: {1}]  }
   0x1 LB: > { %s2203_s13 = sadd.s32 4294967295, %s2174_s12   ;;  %p1606_p0 = scmp.ge.s32.totalorder %s2174_s12, 1  ;;  %s2174_s12 = sphi %s2197_s12, %s14_s12  }
   0x2   : > { %p142_p1 = scmp.lt.s32.totalorder %s2174_s12, 3 }
   0x4   : > { %p143_p2 = pnand %p1606_p0, %p142_p1 }
   0x5   : > { %v2056_v0 = vld [vmem:[%s2599_s1] sm:$0xff] (!%p143_p2)   ;;  %v2176_v1 = vmov (!%p143_p2), 0   ;;  %s1607_s16 = sshll.u32 (!%p143_p2), %s2203_s13, 6  ;;  %v2057_v2 = vld [vmem:[%s2599_s1 + $0x8] sm:$0xff] (!%p143_p2)   ;;  %v2058_v3 = vld [vmem:[%s2599_s1 + $0x10] sm:$0xff] (!%p143_p2)   ;;  %p184_p4 = scmp.lt.s32.totalorder (!%p143_p2), %s2203_s13, 1 }
   0x6   : > { %146 = sbr.rel (%p143_p2) target bundleno = 486 (0x1e6), region = 28  ;;  %701 = vmatprep.subr.bf16.mxu0 (!%p143_p2), %v2176_v1  ;;  %2015 = vmatprep.subr.bf16.mxu1 (!%p143_p2), %v2176_v1  ;;  %p172_p3 = scmp.lt.s32.totalorder (!%p143_p2), %s1607_s16, 127  ;;  %v2059_v4 = vld [vmem:[%s2599_s1 + $0x18] sm:$0xff] (!%p143_p2)   ;;  %v2060_v5 = vld [vmem:[%s2599_s1 + $0x20] sm:$0xff] (!%p143_p2)   ;;  %v2061_v7 = vld [vmem:[%s2599_s1 + $0x28] sm:$0xff] (!%p143_p2)   ;;  %vm1512_vm0 = vcmask (!%p143_p2), 1040384  }
   0x7   : > { %702 = vmatpush1.bf16.msra.mxu0 (!%p143_p2), %v2056_v0  ;;  %2031 = vmatpush1.bf16.msra.mxu1 (!%p143_p2), %v2056_v0  ;;  %v2062_v8 = vld [vmem:[%s2599_s1 + $0x30] sm:$0xff] (!%p143_p2)   ;;  %v2063_v9 = vld [vmem:[%s2599_s1 + $0x38] sm:$0xff] (!%p143_p2)   ;;  %v2064_v11 = vld [vmem:[%s2599_s1 + $0x40] sm:$0xff] (!%p143_p2)  }
   0x8   : > { %703 = vmatprep.subr.bf16.mxu0 (!%p143_p2), %v2176_v1  ;;  %2016 = vmatprep.subr.bf16.mxu1 (!%p143_p2), %v2176_v1  ;;  %v2065_v12 = vld [vmem:[%s2599_s1 + $0x48] sm:$0xff] (!%p143_p2)   ;;  %v2066_v13 = vld [vmem:[%s2599_s1 + $0x50] sm:$0xff] (!%p143_p2)   ;;  %v2067_v14 = vld [vmem:[%s2599_s1 + $0x58] sm:$0xff] (!%p143_p2)  }
   0x9   : > { %v2068_v15 = vld [vmem:[%s2599_s1 + $0x60] sm:$0xff] (!%p143_p2)   ;;  %v2069_v16 = vld [vmem:[%s2599_s1 + $0x68] sm:$0xff] (!%p143_p2)   ;;  %v2070_v17 = vld [vmem:[%s2599_s1 + $0x70] sm:$0xff] (!%p143_p2)  }
   0xa   : > { %v2071_v18 = vld [vmem:[%s2599_s1 + $0x78] sm:$0xff] (!%p143_p2)  }
   0xb   : > { %704 = vmatpush1.bf16.msra.mxu0 (!%p143_p2), %v2057_v2  ;;  %2032 = vmatpush1.bf16.msra.mxu1 (!%p143_p2), %v2057_v2 }
   0xc   : > { %705 = vmatprep.subr.bf16.mxu0 (!%p143_p2), %v2176_v1  ;;  %2017 = vmatprep.subr.bf16.mxu1 (!%p143_p2), %v2176_v1 }
   0xd   : > { %s2603_s16 = smov (!%p172_p3, %s1607_s16), 127  ;;  %s2605_s13 = smov (!%p184_p4, %s2203_s13), 1 }
   0xe   : > { %s1759_s23 = sshll.u32 %s2603_s16, 3  ;;  %s1611_s27 = sshll.u32 %s2603_s16, 2 }
   0xf   : > { %706 = vmatpush1.bf16.msra.mxu0 %v2058_v3  ;;  %2033 = vmatpush1.bf16.msra.mxu1 %v2058_v3  ;;  %s2237_s28 = scalar_lea.vmem %s2598_s0, %s1759_s23  ;;  %s2366_s4 = scalar_lea.vmem %s2600_s2, %s1611_s27 }
  0x10   : > { %707 = vmatprep.subr.bf16.mxu0 %v2176_v1  ;;  %2018 = vmatprep.subr.bf16.mxu1 %v2176_v1  ;;  %v2074_v6 = vld [vmem:[%s2237_s28 + $0x4] ss:$8 sps:$4 sm:$0xff]   ;;  %v2072_v19 = vld [vmem:[%s2237_s28] ss:$8 sps:$4 sm:$0xff]   ;;  %v2075_v21 = vld [vmem:[%s2237_s28 + $0x14] ss:$8 sps:$4 sm:$0xff]  }
  0x11   : > { %733 = vmatprep.mubr.bf16.mxu0 %v2074_v6  ;;  %v2098_v10 = vld [vmem:[%s2237_s28 + $0x104] ss:$8 sps:$4 sm:$0xff]   ;;  %v2096_v20 = vld [vmem:[%s2237_s28 + $0x100] ss:$8 sps:$4 sm:$0xff]   ;;  %v2102_v22 = vld [vmem:[%s2237_s28 + $0x114] ss:$8 sps:$4 sm:$0xff]  }
  0x12   : > { %861 = vmatprep.mubr.bf16.mxu1 %v2098_v10  ;;  %v2077_v23 = vld [vmem:[%s2237_s28 + $0x10] ss:$8 sps:$4 sm:$0xff]   ;;  %v2078_v25 = vld [vmem:[%s2237_s28 + $0x24] ss:$8 sps:$4 sm:$0xff]   ;;  %v2080_v27 = vld [vmem:[%s2237_s28 + $0x20] ss:$8 sps:$4 sm:$0xff]  }
  0x13   : > { %708 = vmatpush1.bf16.msra.mxu0 %v2059_v4  ;;  %2034 = vmatpush1.bf16.msra.mxu1 %v2059_v4  ;;  %v2104_v24 = vld [vmem:[%s2237_s28 + $0x110] ss:$8 sps:$4 sm:$0xff]   ;;  %v2108_v26 = vld [vmem:[%s2237_s28 + $0x124] ss:$8 sps:$4 sm:$0xff]   ;;  %v2110_v28 = vld [vmem:[%s2237_s28 + $0x120] ss:$8 sps:$4 sm:$0xff]  }
  0x14   : > { %709 = vmatprep.subr.bf16.mxu0 %v2176_v1  ;;  %2019 = vmatprep.subr.bf16.mxu1 %v2176_v1  ;;  %v2081_v29 = vld [vmem:[%s2237_s28 + $0x34] ss:$8 sps:$4 sm:$0xff]   ;;  %v2083_v31 = vld [vmem:[%s2237_s28 + $0x30] ss:$8 sps:$4 sm:$0xff]   ;;  %v2084_v33 = vld [vmem:[%s2237_s28 + $0x44] ss:$8 sps:$4 sm:$0xff]  }
  0x15   : > { %v2114_v30 = vld [vmem:[%s2237_s28 + $0x134] ss:$8 sps:$4 sm:$0xff]   ;;  %v2116_v32 = vld [vmem:[%s2237_s28 + $0x130] ss:$8 sps:$4 sm:$0xff]   ;;  %v2120_v34 = vld [vmem:[%s2237_s28 + $0x144] ss:$8 sps:$4 sm:$0xff]  }
  0x16   : > { %v2086_v35 = vld [vmem:[%s2237_s28 + $0x40] ss:$8 sps:$4 sm:$0xff]   ;;  %v2087_v37 = vld [vmem:[%s2237_s28 + $0x54] ss:$8 sps:$4 sm:$0xff]   ;;  %v2089_v39 = vld [vmem:[%s2237_s28 + $0x50] ss:$8 sps:$4 sm:$0xff]  }
  0x17   : > { %710 = vmatpush1.bf16.msra.mxu0 %v2060_v5  ;;  %2035 = vmatpush1.bf16.msra.mxu1 %v2060_v5  ;;  %v2122_v36 = vld [vmem:[%s2237_s28 + $0x140] ss:$8 sps:$4 sm:$0xff]   ;;  %v2126_v38 = vld [vmem:[%s2237_s28 + $0x154] ss:$8 sps:$4 sm:$0xff]   ;;  %v2128_v40 = vld [vmem:[%s2237_s28 + $0x150] ss:$8 sps:$4 sm:$0xff]  }
  0x18   : > { %711 = vmatprep.subr.bf16.mxu0 %v2176_v1  ;;  %2020 = vmatprep.subr.bf16.mxu1 %v2176_v1  ;;  %v2090_v41 = vld [vmem:[%s2237_s28 + $0x64] ss:$8 sps:$4 sm:$0xff]   ;;  %v2092_v43 = vld [vmem:[%s2237_s28 + $0x60] ss:$8 sps:$4 sm:$0xff]   ;;  %v2093_v45 = vld [vmem:[%s2237_s28 + $0x74] ss:$8 sps:$4 sm:$0xff]  }
  0x19   : > { %v2132_v42 = vld [vmem:[%s2237_s28 + $0x164] ss:$8 sps:$4 sm:$0xff]   ;;  %v2134_v44 = vld [vmem:[%s2237_s28 + $0x160] ss:$8 sps:$4 sm:$0xff]   ;;  %v2138_v46 = vld [vmem:[%s2237_s28 + $0x174] ss:$8 sps:$4 sm:$0xff]  }
  0x1a   : > { %v2095_v47 = vld [vmem:[%s2237_s28 + $0x70] ss:$8 sps:$4 sm:$0xff]   ;;  %v2099_v49 = vld [vmem:[%s2237_s28 + $0x84] ss:$8 sps:$4 sm:$0xff]   ;;  %v2101_v51 = vld [vmem:[%s2237_s28 + $0x80] ss:$8 sps:$4 sm:$0xff]  }
  0x1b   : > { %712 = vmatpush1.bf16.msra.mxu0 %v2061_v7  ;;  %2036 = vmatpush1.bf16.msra.mxu1 %v2061_v7  ;;  %v2140_v48 = vld [vmem:[%s2237_s28 + $0x170] ss:$8 sps:$4 sm:$0xff]   ;;  %v2144_v50 = vld [vmem:[%s2237_s28 + $0x184] ss:$8 sps:$4 sm:$0xff]   ;;  %v2146_v52 = vld [vmem:[%s2237_s28 + $0x180] ss:$8 sps:$4 sm:$0xff]  }
  0x1c   : > { %713 = vmatprep.subr.bf16.mxu0 %v2176_v1  ;;  %2021 = vmatprep.subr.bf16.mxu1 %v2176_v1  ;;  %v2105_v53 = vld [vmem:[%s2237_s28 + $0x94] ss:$8 sps:$4 sm:$0xff]   ;;  %v2107_v55 = vld [vmem:[%s2237_s28 + $0x90] ss:$8 sps:$4 sm:$0xff]   ;;  %v2111_v57 = vld [vmem:[%s2237_s28 + $0xa4] ss:$8 sps:$4 sm:$0xff]  }
  0x1d   : > { %v2147_v54 = vld [vmem:[%s2237_s28 + $0x194] ss:$8 sps:$4 sm:$0xff]   ;;  %v2149_v56 = vld [vmem:[%s2237_s28 + $0x190] ss:$8 sps:$4 sm:$0xff]   ;;  %v2150_v58 = vld [vmem:[%s2237_s28 + $0x1a4] ss:$8 sps:$4 sm:$0xff]  }
  0x1e   : > { %v2113_v59 = vld [vmem:[%s2237_s28 + $0xa0] ss:$8 sps:$4 sm:$0xff]   ;;  %v2117_v61 = vld [vmem:[%s2237_s28 + $0xb4] ss:$8 sps:$4 sm:$0xff]   ;;  %v2119_v63 = vld [vmem:[%s2237_s28 + $0xb0] ss:$8 sps:$4 sm:$0xff]  }
  0x1f   : > { %714 = vmatpush1.bf16.msra.mxu0 %v2062_v8  ;;  %2037 = vmatpush1.bf16.msra.mxu1 %v2062_v8  ;;  %v2152_v60 = vld [vmem:[%s2237_s28 + $0x1a0] ss:$8 sps:$4 sm:$0xff]   ;;  %v2153_v62 = vld [vmem:[%s2237_s28 + $0x1b4] ss:$8 sps:$4 sm:$0xff]   ;;  %v2155_v0 = vld [vmem:[%s2237_s28 + $0x1b0] ss:$8 sps:$4 sm:$0xff]  }
  0x20   : > { %715 = vmatprep.subr.bf16.mxu0 %v2176_v1  ;;  %2022 = vmatprep.subr.bf16.mxu1 %v2176_v1  ;;  %v2156_v2 = vld [vmem:[%s2237_s28 + $0x1c4] ss:$8 sps:$4 sm:$0xff]   ;;  %v2125_v3 = vld [vmem:[%s2237_s28 + $0xc0] ss:$8 sps:$4 sm:$0xff]   ;;  %v2129_v5 = vld [vmem:[%s2237_s28 + $0xd4] ss:$8 sps:$4 sm:$0xff]  }
  0x21   : > { %v2158_v4 = vld [vmem:[%s2237_s28 + $0x1c0] ss:$8 sps:$4 sm:$0xff]   ;;  %v2159_v6 = vld [vmem:[%s2237_s28 + $0x1d4] ss:$8 sps:$4 sm:$0xff]   ;;  %v2131_v7 = vld [vmem:[%s2237_s28 + $0xd0] ss:$8 sps:$4 sm:$0xff]  }
  0x22   : > { %v2161_v8 = vld [vmem:[%s2237_s28 + $0x1d0] ss:$8 sps:$4 sm:$0xff]   ;;  %v2162_v10 = vld [vmem:[%s2237_s28 + $0x1e4] ss:$8 sps:$4 sm:$0xff]   ;;  %s1612_s16 = sshll.u32 %s2605_s13, 1 }
  0x23   : > { %716 = vmatpush1.bf16.msra.mxu0 %v2063_v9  ;;  %2038 = vmatpush1.bf16.msra.mxu1 %v2063_v9  ;;  %v2135_v9 = vld [vmem:[%s2237_s28 + $0xe4] ss:$8 sps:$4 sm:$0xff]   ;;  %s187_s6 = scalar_lea.vmem %s2601_s3, %s1612_s16 }
  0x24   : > { %717 = vmatprep.subr.bf16.mxu0 %v2176_v1  ;;  %2023 = vmatprep.subr.bf16.mxu1 %v2176_v1 }
  0x27   : > { %718 = vmatpush1.bf16.msra.mxu0 %v2064_v11  ;;  %2039 = vmatpush1.bf16.msra.mxu1 %v2064_v11  ;;  %v2137_v11 = vld [vmem:[%s2237_s28 + $0xe0] ss:$8 sps:$4 sm:$0xff]  }
  0x28   : > { %719 = vmatprep.subr.bf16.mxu0 %v2176_v1  ;;  %2024 = vmatprep.subr.bf16.mxu1 %v2176_v1 }
  0x2b   : > { %720 = vmatpush1.bf16.msra.mxu0 %v2065_v12  ;;  %2040 = vmatpush1.bf16.msra.mxu1 %v2065_v12  ;;  %v2164_v12 = vld [vmem:[%s2237_s28 + $0x1e0] ss:$8 sps:$4 sm:$0xff]  }
  0x2c   : > { %721 = vmatprep.subr.bf16.mxu0 %v2176_v1  ;;  %2025 = vmatprep.subr.bf16.mxu1 %v2176_v1 }
  0x2f   : > { %722 = vmatpush1.bf16.msra.mxu0 %v2066_v13  ;;  %2041 = vmatpush1.bf16.msra.mxu1 %v2066_v13  ;;  %v2141_v13 = vld [vmem:[%s2237_s28 + $0xf4] ss:$8 sps:$4 sm:$0xff]  }
  0x30   : > { %723 = vmatprep.subr.bf16.mxu0 %v2176_v1  ;;  %2026 = vmatprep.subr.bf16.mxu1 %v2176_v1 }
  0x33   : > { %724 = vmatpush1.bf16.msra.mxu0 %v2067_v14  ;;  %2042 = vmatpush1.bf16.msra.mxu1 %v2067_v14  ;;  %v2165_v14 = vld [vmem:[%s2237_s28 + $0x1f4] ss:$8 sps:$4 sm:$0xff]  }
  0x34   : > { %725 = vmatprep.subr.bf16.mxu0 %v2176_v1  ;;  %2027 = vmatprep.subr.bf16.mxu1 %v2176_v1 }
  0x37   : > { %726 = vmatpush1.bf16.msra.mxu0 %v2068_v15  ;;  %2043 = vmatpush1.bf16.msra.mxu1 %v2068_v15  ;;  %v2143_v15 = vld [vmem:[%s2237_s28 + $0xf0] ss:$8 sps:$4 sm:$0xff]  }
  0x38   : > { %727 = vmatprep.subr.bf16.mxu0 %v2176_v1  ;;  %2028 = vmatprep.subr.bf16.mxu1 %v2176_v1 }
  0x3b   : > { %728 = vmatpush1.bf16.msra.mxu0 %v2069_v16  ;;  %2044 = vmatpush1.bf16.msra.mxu1 %v2069_v16  ;;  %v2167_v16 = vld [vmem:[%s2237_s28 + $0x1f0] ss:$8 sps:$4 sm:$0xff]  }
  0x3c   : > { %729 = vmatprep.subr.bf16.mxu0 %v2176_v1  ;;  %2029 = vmatprep.subr.bf16.mxu1 %v2176_v1 }
  0x3f   : > { %730 = vmatpush1.bf16.msra.mxu0 %v2070_v17  ;;  %2045 = vmatpush1.bf16.msra.mxu1 %v2070_v17 }
  0x40   : > { %731 = vmatprep.subr.bf16.mxu0 %v2176_v1  ;;  %2030 = vmatprep.subr.bf16.mxu1 %v2176_v1  ;;  %v2123_v1 = vld [vmem:[%s2237_s28 + $0xc4] ss:$8 sps:$4 sm:$0xff]  }
  0x43   : > { %732 = vmatpush1.bf16.msra.mxu0 %v2071_v18  ;;  %2046 = vmatpush1.bf16.msra.mxu1 %v2071_v18 }
  0x46   : > { %734 = vmatmul.mubr.bf16.vlgmr.msra.gmra.mrb[0].mxu0 %v2072_v19  ;;  %862 = vmatmul.mubr.bf16.vlgmr.msra.gmra.mrb[0].mxu1 %v2096_v20 }
  0x47   : > { %741 = vmatprep.mubr.bf16.mxu0 %v2075_v21  ;;  %869 = vmatprep.mubr.bf16.mxu1 %v2102_v22 }
  0x4e   : > { %742 = vmatmul.mubr.bf16.gmra.mrb[4].mxu0 %v2077_v23  ;;  %870 = vmatmul.mubr.bf16.gmra.mrb[4].mxu1 %v2104_v24 }
  0x4f   : > { %749 = vmatprep.mubr.bf16.mxu0 %v2078_v25  ;;  %877 = vmatprep.mubr.bf16.mxu1 %v2108_v26 }
  0x56   : > { %750 = vmatmul.mubr.bf16.gmra.mrb[8].mxu0 %v2080_v27  ;;  %878 = vmatmul.mubr.bf16.gmra.mrb[8].mxu1 %v2110_v28 }
  0x57   : > { %757 = vmatprep.mubr.bf16.mxu0 %v2081_v29  ;;  %885 = vmatprep.mubr.bf16.mxu1 %v2114_v30 }
  0x5e   : > { %758 = vmatmul.mubr.bf16.gmra.mrb[12].mxu0 %v2083_v31  ;;  %886 = vmatmul.mubr.bf16.gmra.mrb[12].mxu1 %v2116_v32 }
  0x5f   : > { %765 = vmatprep.mubr.bf16.mxu0 %v2084_v33  ;;  %893 = vmatprep.mubr.bf16.mxu1 %v2120_v34 }
  0x66   : > { %766 = vmatmul.mubr.bf16.gmra.mrb[16].mxu0 %v2086_v35  ;;  %894 = vmatmul.mubr.bf16.gmra.mrb[16].mxu1 %v2122_v36 }
  0x67   : > { %773 = vmatprep.mubr.bf16.mxu0 %v2087_v37  ;;  %901 = vmatprep.mubr.bf16.mxu1 %v2126_v38 }
  0x6e   : > { %774 = vmatmul.mubr.bf16.gmra.mrb[20].mxu0 %v2089_v39  ;;  %902 = vmatmul.mubr.bf16.gmra.mrb[20].mxu1 %v2128_v40 }
  0x6f   : > { %781 = vmatprep.mubr.bf16.mxu0 %v2090_v41  ;;  %909 = vmatprep.mubr.bf16.mxu1 %v2132_v42 }
  0x76   : > { %782 = vmatmul.mubr.bf16.gmra.mrb[24].mxu0 %v2092_v43  ;;  %910 = vmatmul.mubr.bf16.gmra.mrb[24].mxu1 %v2134_v44 }
  0x77   : > { %789 = vmatprep.mubr.bf16.mxu0 %v2093_v45  ;;  %917 = vmatprep.mubr.bf16.mxu1 %v2138_v46 }
  0x7e   : > { %790 = vmatmul.mubr.bf16.gmra.mrb[28].mxu0 %v2095_v47  ;;  %918 = vmatmul.mubr.bf16.gmra.mrb[28].mxu1 %v2140_v48 }
  0x7f   : > { %797 = vmatprep.mubr.bf16.mxu0 %v2099_v49  ;;  %925 = vmatprep.mubr.bf16.mxu1 %v2144_v50 }
  0x86   : > { %798 = vmatmul.mubr.bf16.gmra.mrb[32].mxu0 %v2101_v51  ;;  %926 = vmatmul.mubr.bf16.gmra.mrb[32].mxu1 %v2146_v52 }
  0x87   : > { %805 = vmatprep.mubr.bf16.mxu0 %v2105_v53  ;;  %933 = vmatprep.mubr.bf16.mxu1 %v2147_v54 }
  0x8e   : > { %806 = vmatmul.mubr.bf16.gmra.mrb[36].mxu0 %v2107_v55  ;;  %934 = vmatmul.mubr.bf16.gmra.mrb[36].mxu1 %v2149_v56 }
  0x8f   : > { %813 = vmatprep.mubr.bf16.mxu0 %v2111_v57  ;;  %941 = vmatprep.mubr.bf16.mxu1 %v2150_v58 }
  0x96   : > { %814 = vmatmul.mubr.bf16.gmra.mrb[40].mxu0 %v2113_v59  ;;  %942 = vmatmul.mubr.bf16.gmra.mrb[40].mxu1 %v2152_v60 }
  0x97   : > { %821 = vmatprep.mubr.bf16.mxu0 %v2117_v61  ;;  %949 = vmatprep.mubr.bf16.mxu1 %v2153_v62 }
  0x9e   : > { %822 = vmatmul.mubr.bf16.gmra.mrb[44].mxu0 %v2119_v63  ;;  %950 = vmatmul.mubr.bf16.gmra.mrb[44].mxu1 %v2155_v0 }
  0x9f   : > { %829 = vmatprep.mubr.bf16.mxu0 %v2123_v1  ;;  %957 = vmatprep.mubr.bf16.mxu1 %v2156_v2 }
  0xa6   : > { %830 = vmatmul.mubr.bf16.gmra.mrb[48].mxu0 %v2125_v3  ;;  %958 = vmatmul.mubr.bf16.gmra.mrb[48].mxu1 %v2158_v4 }
  0xa7   : > { %837 = vmatprep.mubr.bf16.mxu0 %v2129_v5  ;;  %965 = vmatprep.mubr.bf16.mxu1 %v2159_v6 }
  0xae   : > { %838 = vmatmul.mubr.bf16.gmra.mrb[52].mxu0 %v2131_v7  ;;  %966 = vmatmul.mubr.bf16.gmra.mrb[52].mxu1 %v2161_v8 }
  0xaf   : > { %845 = vmatprep.mubr.bf16.mxu0 %v2135_v9  ;;  %973 = vmatprep.mubr.bf16.mxu1 %v2162_v10 }
  0xb6   : > { %846 = vmatmul.mubr.bf16.gmra.mrb[56].mxu0 %v2137_v11  ;;  %974 = vmatmul.mubr.bf16.gmra.mrb[56].mxu1 %v2164_v12 }
  0xb7   : > { %853 = vmatprep.mubr.bf16.mxu0 %v2141_v13  ;;  %981 = vmatprep.mubr.bf16.mxu1 %v2165_v14 }
  0xbe   : > { %854 = vmatmul.mubr.bf16.gmra.mrb[60].mxu0 %v2143_v15  ;;  %982 = vmatmul.mubr.bf16.gmra.mrb[60].mxu1 %v2167_v16 }
 0x119   : > { %v735_v17 = vpop.f32.mrb[0].mxu0  ;;  %v2361_v18 = vpop.f32.mrb[0].mxu1 }
 0x11a   : > { %v737_v19 = vpop.f32.mrb[1].mxu0  ;;  %v865_v20 = vpop.f32.mrb[1].mxu1  ;;  %v1379_v21 = vmul.f32 %v735_v17, %v735_v17 }
 0x11b   : > { %v738_v22 = vpop.f32.mrb[2].mxu0  ;;  %v2368_v23 = vpop.f32.mrb[2].mxu1 }
 0x11c   : > { %v1827_v24 = vpack.c.bf16 %v738_v22, %v735_v17  ;;  %v1310_v25 = vadd.f32 %v738_v22, %v735_v17  ;;  %v1380_v26 = vmul.f32 %v738_v22, %v738_v22  ;;  %v740_v27 = vpop.f32.mrb[3].mxu0  ;;  %v1907_v28 = vpack.c.bf16 %v2368_v23, %v2361_v18  ;;  %v868_v29 = vpop.f32.mrb[3].mxu1 }
 0x11e   : > { %1828 = vst [vmem:[%s2366_s4] sm:$0xff] %v1827_v24   ;;  %v1443_v30 = vadd.f32 %v1380_v26, %v1379_v21  ;;  %1999 = vst [vmem:[%s2366_s4 + $0x80] sm:$0xff] %v1907_v28  }
 0x121   : > { %v743_v31 = vpop.f32.mrb[4].mxu0  ;;  %v2374_v32 = vpop.f32.mrb[4].mxu1 }
 0x122   : > { %v1311_v33 = vadd.f32 %v1310_v25, %v743_v31  ;;  %v1381_v34 = vmul.f32 %v743_v31, %v743_v31  ;;  %v745_v35 = vpop.f32.mrb[5].mxu0  ;;  %v873_v36 = vpop.f32.mrb[5].mxu1 }
 0x123   : > { %v746_v37 = vpop.f32.mrb[6].mxu0  ;;  %v2376_v38 = vpop.f32.mrb[6].mxu1 }
 0x124   : > { %v1444_v39 = vadd.f32 %v1443_v30, %v1381_v34  ;;  %v1832_v40 = vpack.c.bf16 %v746_v37, %v743_v31  ;;  %v1312_v41 = vadd.f32 %v1311_v33, %v746_v37  ;;  %v1382_v42 = vmul.f32 %v746_v37, %v746_v37  ;;  %v748_v43 = vpop.f32.mrb[7].mxu0  ;;  %v876_v44 = vpop.f32.mrb[7].mxu1 }
 0x125   : > { %v1912_v45 = vpack.c.bf16 %v2376_v38, %v2374_v32 }
 0x126   : > { %1984 = vst [vmem:[%s2366_s4 + $0x8] sm:$0xff] %v1832_v40   ;;  %v1445_v46 = vadd.f32 %v1444_v39, %v1382_v42 }
 0x127   : > { %2000 = vst [vmem:[%s2366_s4 + $0x88] sm:$0xff] %v1912_v45  }
 0x129   : > { %v751_v47 = vpop.f32.mrb[8].mxu0  ;;  %v2382_v48 = vpop.f32.mrb[8].mxu1 }
 0x12a   : > { %v1313_v49 = vadd.f32 %v1312_v41, %v751_v47  ;;  %v1383_v50 = vmul.f32 %v751_v47, %v751_v47  ;;  %v753_v51 = vpop.f32.mrb[9].mxu0  ;;  %v881_v52 = vpop.f32.mrb[9].mxu1 }
 0x12b   : > { %v754_v53 = vpop.f32.mrb[10].mxu0  ;;  %v2384_v54 = vpop.f32.mrb[10].mxu1 }
 0x12c   : > { %v1446_v55 = vadd.f32 %v1445_v46, %v1383_v50  ;;  %v1837_v56 = vpack.c.bf16 %v754_v53, %v751_v47  ;;  %v1314_v57 = vadd.f32 %v1313_v49, %v754_v53  ;;  %v1384_v58 = vmul.f32 %v754_v53, %v754_v53  ;;  %v756_v59 = vpop.f32.mrb[11].mxu0  ;;  %v884_v60 = vpop.f32.mrb[11].mxu1 }
 0x12d   : > { %v1917_v61 = vpack.c.bf16 %v2384_v54, %v2382_v48 }
 0x12e   : > { %1985 = vst [vmem:[%s2366_s4 + $0x10] sm:$0xff] %v1837_v56   ;;  %v1447_v62 = vadd.f32 %v1446_v55, %v1384_v58 }
 0x12f   : > { %2001 = vst [vmem:[%s2366_s4 + $0x90] sm:$0xff] %v1917_v61  }
 0x131   : > { %v759_v63 = vpop.f32.mrb[12].mxu0  ;;  %v2390_v0 = vpop.f32.mrb[12].mxu1 }
 0x132   : > { %v1315_v1 = vadd.f32 %v1314_v57, %v759_v63  ;;  %v1385_v2 = vmul.f32 %v759_v63, %v759_v63  ;;  %v761_v3 = vpop.f32.mrb[13].mxu0  ;;  %v889_v4 = vpop.f32.mrb[13].mxu1 }
 0x133   : > { %v762_v5 = vpop.f32.mrb[14].mxu0  ;;  %v2392_v6 = vpop.f32.mrb[14].mxu1 }
 0x134   : > { %v1448_v7 = vadd.f32 %v1447_v62, %v1385_v2  ;;  %v1842_v8 = vpack.c.bf16 %v762_v5, %v759_v63  ;;  %v1316_v9 = vadd.f32 %v1315_v1, %v762_v5  ;;  %v1386_v10 = vmul.f32 %v762_v5, %v762_v5  ;;  %v764_v11 = vpop.f32.mrb[15].mxu0  ;;  %v892_v12 = vpop.f32.mrb[15].mxu1 }
 0x135   : > { %v1922_v13 = vpack.c.bf16 %v2392_v6, %v2390_v0 }
 0x136   : > { %1986 = vst [vmem:[%s2366_s4 + $0x18] sm:$0xff] %v1842_v8   ;;  %v1449_v14 = vadd.f32 %v1448_v7, %v1386_v10 }
 0x137   : > { %2002 = vst [vmem:[%s2366_s4 + $0x98] sm:$0xff] %v1922_v13  }
 0x139   : > { %v767_v15 = vpop.f32.mrb[16].mxu0  ;;  %v2398_v16 = vpop.f32.mrb[16].mxu1 }
 0x13a   : > { %v1317_v17 = vadd.f32 %v1316_v9, %v767_v15  ;;  %v1387_v19 = vmul.f32 %v767_v15, %v767_v15  ;;  %v769_v20 = vpop.f32.mrb[17].mxu0  ;;  %v897_v21 = vpop.f32.mrb[17].mxu1 }
 0x13b   : > { %v770_v22 = vpop.f32.mrb[18].mxu0  ;;  %v2400_v24 = vpop.f32.mrb[18].mxu1 }
 0x13c   : > { %v1450_v25 = vadd.f32 %v1449_v14, %v1387_v19  ;;  %v1847_v26 = vpack.c.bf16 %v770_v22, %v767_v15  ;;  %v1318_v27 = vadd.f32 %v1317_v17, %v770_v22  ;;  %v1388_v28 = vmul.f32 %v770_v22, %v770_v22  ;;  %v772_v29 = vpop.f32.mrb[19].mxu0  ;;  %v900_v30 = vpop.f32.mrb[19].mxu1 }
 0x13d   : > { %v1927_v31 = vpack.c.bf16 %v2400_v24, %v2398_v16 }
 0x13e   : > { %1987 = vst [vmem:[%s2366_s4 + $0x20] sm:$0xff] %v1847_v26   ;;  %v1451_v33 = vadd.f32 %v1450_v25, %v1388_v28 }
 0x13f   : > { %2003 = vst [vmem:[%s2366_s4 + $0xa0] sm:$0xff] %v1927_v31  }
 0x141   : > { %v775_v34 = vpop.f32.mrb[20].mxu0  ;;  %v2406_v35 = vpop.f32.mrb[20].mxu1 }
 0x142   : > { %v1319_v36 = vadd.f32 %v1318_v27, %v775_v34  ;;  %v1389_v37 = vmul.f32 %v775_v34, %v775_v34  ;;  %v777_v39 = vpop.f32.mrb[21].mxu0  ;;  %v905_v40 = vpop.f32.mrb[21].mxu1 }
 0x143   : > { %v778_v41 = vpop.f32.mrb[22].mxu0  ;;  %v2408_v42 = vpop.f32.mrb[22].mxu1 }
 0x144   : > { %v1452_v43 = vadd.f32 %v1451_v33, %v1389_v37  ;;  %v1852_v44 = vpack.c.bf16 %v778_v41, %v775_v34  ;;  %v1320_v45 = vadd.f32 %v1319_v36, %v778_v41  ;;  %v1390_v46 = vmul.f32 %v778_v41, %v778_v41  ;;  %v780_v47 = vpop.f32.mrb[23].mxu0  ;;  %v908_v49 = vpop.f32.mrb[23].mxu1 }
 0x145   : > { %v1932_v50 = vpack.c.bf16 %v2408_v42, %v2406_v35 }
 0x146   : > { %1988 = vst [vmem:[%s2366_s4 + $0x28] sm:$0xff] %v1852_v44   ;;  %v1453_v51 = vadd.f32 %v1452_v43, %v1390_v46 }
 0x147   : > { %2004 = vst [vmem:[%s2366_s4 + $0xa8] sm:$0xff] %v1932_v50  }
 0x149   : > { %v783_v52 = vpop.f32.mrb[24].mxu0  ;;  %v2414_v53 = vpop.f32.mrb[24].mxu1 }
 0x14a   : > { %v1321_v55 = vadd.f32 %v1320_v45, %v783_v52  ;;  %v1391_v56 = vmul.f32 %v783_v52, %v783_v52  ;;  %v785_v57 = vpop.f32.mrb[25].mxu0  ;;  %v913_v58 = vpop.f32.mrb[25].mxu1 }
 0x14b   : > { %v786_v59 = vpop.f32.mrb[26].mxu0  ;;  %v2416_v60 = vpop.f32.mrb[26].mxu1 }
 0x14c   : > { %v1454_v61 = vadd.f32 %v1453_v51, %v1391_v56  ;;  %v1857_v62 = vpack.c.bf16 %v786_v59, %v783_v52  ;;  %v1322_v63 = vadd.f32 %v1321_v55, %v786_v59  ;;  %v1392_v1 = vmul.f32 %v786_v59, %v786_v59  ;;  %v788_v2 = vpop.f32.mrb[27].mxu0  ;;  %v916_v3 = vpop.f32.mrb[27].mxu1 }
 0x14d   : > { %v1937_v4 = vpack.c.bf16 %v2416_v60, %v2414_v53 }
 0x14e   : > { %1989 = vst [vmem:[%s2366_s4 + $0x30] sm:$0xff] %v1857_v62   ;;  %v1455_v5 = vadd.f32 %v1454_v61, %v1392_v1 }
 0x14f   : > { %2005 = vst [vmem:[%s2366_s4 + $0xb0] sm:$0xff] %v1937_v4  }
 0x151   : > { %v791_v7 = vpop.f32.mrb[28].mxu0  ;;  %v2422_v8 = vpop.f32.mrb[28].mxu1 }
 0x152   : > { %v1323_v9 = vadd.f32 %v1322_v63, %v791_v7  ;;  %v1393_v10 = vmul.f32 %v791_v7, %v791_v7  ;;  %v793_v11 = vpop.f32.mrb[29].mxu0  ;;  %v921_v12 = vpop.f32.mrb[29].mxu1 }
 0x153   : > { %v794_v13 = vpop.f32.mrb[30].mxu0  ;;  %v2424_v14 = vpop.f32.mrb[30].mxu1 }
 0x154   : > { %v1456_v15 = vadd.f32 %v1455_v5, %v1393_v10  ;;  %v1862_v17 = vpack.c.bf16 %v794_v13, %v791_v7  ;;  %v1324_v19 = vadd.f32 %v1323_v9, %v794_v13  ;;  %v1394_v20 = vmul.f32 %v794_v13, %v794_v13  ;;  %v796_v21 = vpop.f32.mrb[31].mxu0  ;;  %v924_v22 = vpop.f32.mrb[31].mxu1 }
 0x155   : > { %v1942_v25 = vpack.c.bf16 %v2424_v14, %v2422_v8 }
 0x156   : > { %1990 = vst [vmem:[%s2366_s4 + $0x38] sm:$0xff] %v1862_v17   ;;  %v1457_v26 = vadd.f32 %v1456_v15, %v1394_v20 }
 0x157   : > { %2006 = vst [vmem:[%s2366_s4 + $0xb8] sm:$0xff] %v1942_v25  }
 0x159   : > { %v799_v27 = vpop.f32.mrb[32].mxu0  ;;  %v2430_v28 = vpop.f32.mrb[32].mxu1 }
 0x15a   : > { %v1325_v29 = vadd.f32 %v1324_v19, %v799_v27  ;;  %v1395_v30 = vmul.f32 %v799_v27, %v799_v27  ;;  %v801_v31 = vpop.f32.mrb[33].mxu0  ;;  %v929_v33 = vpop.f32.mrb[33].mxu1 }
 0x15b   : > { %v802_v34 = vpop.f32.mrb[34].mxu0  ;;  %v2432_v36 = vpop.f32.mrb[34].mxu1 }
 0x15c   : > { %v1458_v37 = vadd.f32 %v1457_v26, %v1395_v30  ;;  %v1867_v39 = vpack.c.bf16 %v802_v34, %v799_v27  ;;  %v1326_v40 = vadd.f32 %v1325_v29, %v802_v34  ;;  %v1396_v41 = vmul.f32 %v802_v34, %v802_v34  ;;  %v804_v43 = vpop.f32.mrb[35].mxu0  ;;  %v932_v44 = vpop.f32.mrb[35].mxu1 }
 0x15d   : > { %v1947_v45 = vpack.c.bf16 %v2432_v36, %v2430_v28 }
 0x15e   : > { %1991 = vst [vmem:[%s2366_s4 + $0x40] sm:$0xff] %v1867_v39   ;;  %v1459_v46 = vadd.f32 %v1458_v37, %v1396_v41 }
 0x15f   : > { %2007 = vst [vmem:[%s2366_s4 + $0xc0] sm:$0xff] %v1947_v45  }
 0x161   : > { %v807_v47 = vpop.f32.mrb[36].mxu0  ;;  %v2438_v49 = vpop.f32.mrb[36].mxu1 }
 0x162   : > { %v1327_v50 = vadd.f32 %v1326_v40, %v807_v47  ;;  %v1397_v51 = vmul.f32 %v807_v47, %v807_v47  ;;  %v809_v52 = vpop.f32.mrb[37].mxu0  ;;  %v937_v55 = vpop.f32.mrb[37].mxu1 }
 0x163   : > { %v810_v56 = vpop.f32.mrb[38].mxu0  ;;  %v2440_v57 = vpop.f32.mrb[38].mxu1 }
 0x164   : > { %v1460_v58 = vadd.f32 %v1459_v46, %v1397_v51  ;;  %v1872_v59 = vpack.c.bf16 %v810_v56, %v807_v47  ;;  %v1328_v61 = vadd.f32 %v1327_v50, %v810_v56  ;;  %v1398_v62 = vmul.f32 %v810_v56, %v810_v56  ;;  %v812_v63 = vpop.f32.mrb[39].mxu0  ;;  %v940_v1 = vpop.f32.mrb[39].mxu1 }
 0x165   : > { %v1952_v2 = vpack.c.bf16 %v2440_v57, %v2438_v49 }
 0x166   : > { %1992 = vst [vmem:[%s2366_s4 + $0x48] sm:$0xff] %v1872_v59   ;;  %v1461_v3 = vadd.f32 %v1460_v58, %v1398_v62 }
 0x167   : > { %2008 = vst [vmem:[%s2366_s4 + $0xc8] sm:$0xff] %v1952_v2  }
 0x169   : > { %v815_v4 = vpop.f32.mrb[40].mxu0  ;;  %v2446_v5 = vpop.f32.mrb[40].mxu1 }
 0x16a   : > { %v1329_v7 = vadd.f32 %v1328_v61, %v815_v4  ;;  %v1399_v9 = vmul.f32 %v815_v4, %v815_v4  ;;  %v817_v10 = vpop.f32.mrb[41].mxu0  ;;  %v945_v11 = vpop.f32.mrb[41].mxu1 }
 0x16b   : > { %v818_v12 = vpop.f32.mrb[42].mxu0  ;;  %v2448_v13 = vpop.f32.mrb[42].mxu1 }
 0x16c   : > { %v1462_v15 = vadd.f32 %v1461_v3, %v1399_v9  ;;  %v1877_v17 = vpack.c.bf16 %v818_v12, %v815_v4  ;;  %v1330_v19 = vadd.f32 %v1329_v7, %v818_v12  ;;  %v1400_v20 = vmul.f32 %v818_v12, %v818_v12  ;;  %v820_v21 = vpop.f32.mrb[43].mxu0  ;;  %v948_v22 = vpop.f32.mrb[43].mxu1 }
 0x16d   : > { %v1957_v25 = vpack.c.bf16 %v2448_v13, %v2446_v5 }
 0x16e   : > { %1993 = vst [vmem:[%s2366_s4 + $0x50] sm:$0xff] %v1877_v17   ;;  %v1463_v26 = vadd.f32 %v1462_v15, %v1400_v20 }
 0x16f   : > { %2009 = vst [vmem:[%s2366_s4 + $0xd0] sm:$0xff] %v1957_v25  }
 0x171   : > { %v823_v27 = vpop.f32.mrb[44].mxu0  ;;  %v2454_v29 = vpop.f32.mrb[44].mxu1 }
 0x172   : > { %v1331_v30 = vadd.f32 %v1330_v19, %v823_v27  ;;  %v1401_v31 = vmul.f32 %v823_v27, %v823_v27  ;;  %v825_v33 = vpop.f32.mrb[45].mxu0  ;;  %v953_v34 = vpop.f32.mrb[45].mxu1 }
 0x173   : > { %v826_v37 = vpop.f32.mrb[46].mxu0  ;;  %v2456_v39 = vpop.f32.mrb[46].mxu1 }
 0x174   : > { %v1464_v40 = vadd.f32 %v1463_v26, %v1401_v31  ;;  %v1882_v41 = vpack.c.bf16 %v826_v37, %v823_v27  ;;  %v1332_v43 = vadd.f32 %v1331_v30, %v826_v37  ;;  %v1402_v44 = vmul.f32 %v826_v37, %v826_v37  ;;  %v828_v45 = vpop.f32.mrb[47].mxu0  ;;  %v956_v46 = vpop.f32.mrb[47].mxu1 }
 0x175   : > { %v1962_v47 = vpack.c.bf16 %v2456_v39, %v2454_v29 }
 0x176   : > { %1994 = vst [vmem:[%s2366_s4 + $0x58] sm:$0xff] %v1882_v41   ;;  %v1465_v50 = vadd.f32 %v1464_v40, %v1402_v44 }
 0x177   : > { %2010 = vst [vmem:[%s2366_s4 + $0xd8] sm:$0xff] %v1962_v47  }
 0x179   : > { %v831_v51 = vpop.f32.mrb[48].mxu0  ;;  %v2462_v52 = vpop.f32.mrb[48].mxu1 }
 0x17a   : > { %v1333_v55 = vadd.f32 %v1332_v43, %v831_v51  ;;  %v1403_v56 = vmul.f32 %v831_v51, %v831_v51  ;;  %v833_v58 = vpop.f32.mrb[49].mxu0  ;;  %v961_v59 = vpop.f32.mrb[49].mxu1 }
 0x17b   : > { %v834_v61 = vpop.f32.mrb[50].mxu0  ;;  %v2464_v62 = vpop.f32.mrb[50].mxu1 }
 0x17c   : > { %v1466_v63 = vadd.f32 %v1465_v50, %v1403_v56  ;;  %v1887_v1 = vpack.c.bf16 %v834_v61, %v831_v51  ;;  %v1334_v2 = vadd.f32 %v1333_v55, %v834_v61  ;;  %v1404_v3 = vmul.f32 %v834_v61, %v834_v61  ;;  %v836_v4 = vpop.f32.mrb[51].mxu0  ;;  %v964_v7 = vpop.f32.mrb[51].mxu1 }
 0x17d   : > { %v1967_v9 = vpack.c.bf16 %v2464_v62, %v2462_v52 }
 0x17e   : > { %1995 = vst [vmem:[%s2366_s4 + $0x60] sm:$0xff] %v1887_v1   ;;  %v1467_v10 = vadd.f32 %v1466_v63, %v1404_v3 }
 0x17f   : > { %2011 = vst [vmem:[%s2366_s4 + $0xe0] sm:$0xff] %v1967_v9  }
 0x181   : > { %v839_v11 = vpop.f32.mrb[52].mxu0  ;;  %v2470_v12 = vpop.f32.mrb[52].mxu1 }
 0x182   : > { %v1335_v15 = vadd.f32 %v1334_v2, %v839_v11  ;;  %v1405_v17 = vmul.f32 %v839_v11, %v839_v11  ;;  %v841_v19 = vpop.f32.mrb[53].mxu0  ;;  %v969_v20 = vpop.f32.mrb[53].mxu1 }
 0x183   : > { %v842_v21 = vpop.f32.mrb[54].mxu0  ;;  %v2472_v22 = vpop.f32.mrb[54].mxu1 }
 0x184   : > { %v1468_v25 = vadd.f32 %v1467_v10, %v1405_v17  ;;  %v1892_v26 = vpack.c.bf16 %v842_v21, %v839_v11  ;;  %v1336_v27 = vadd.f32 %v1335_v15, %v842_v21  ;;  %v1406_v30 = vmul.f32 %v842_v21, %v842_v21  ;;  %v844_v31 = vpop.f32.mrb[55].mxu0  ;;  %v972_v33 = vpop.f32.mrb[55].mxu1 }
 0x185   : > { %v1972_v34 = vpack.c.bf16 %v2472_v22, %v2470_v12 }
 0x186   : > { %1996 = vst [vmem:[%s2366_s4 + $0x68] sm:$0xff] %v1892_v26   ;;  %v1469_v37 = vadd.f32 %v1468_v25, %v1406_v30  ;;  %v1411_v30 = vmul.f32 %v2361_v18, %v2361_v18 }
 0x187   : > { %2012 = vst [vmem:[%s2366_s4 + $0xe8] sm:$0xff] %v1972_v34   ;;  %v1412_v34 = vmul.f32 %v2368_v23, %v2368_v23 }
 0x189   : > { %v847_v40 = vpop.f32.mrb[56].mxu0  ;;  %v2478_v41 = vpop.f32.mrb[56].mxu1 }
 0x18a   : > { %v1337_v43 = vadd.f32 %v1336_v27, %v847_v40  ;;  %v1407_v44 = vmul.f32 %v847_v40, %v847_v40  ;;  %v849_v45 = vpop.f32.mrb[57].mxu0  ;;  %v977_v46 = vpop.f32.mrb[57].mxu1 }
 0x18b   : > { %v850_v47 = vpop.f32.mrb[58].mxu0  ;;  %v2480_v50 = vpop.f32.mrb[58].mxu1  ;;  %v1414_v46 = vmul.f32 %v2376_v38, %v2376_v38 }
 0x18c   : > { %v1470_v51 = vadd.f32 %v1469_v37, %v1407_v44  ;;  %v1897_v55 = vpack.c.bf16 %v850_v47, %v847_v40  ;;  %v1338_v56 = vadd.f32 %v1337_v43, %v850_v47  ;;  %v1408_v58 = vmul.f32 %v850_v47, %v850_v47  ;;  %v852_v59 = vpop.f32.mrb[59].mxu0  ;;  %v980_v61 = vpop.f32.mrb[59].mxu1 }
 0x18d   : > { %v1977_v63 = vpack.c.bf16 %v2480_v50, %v2478_v41  ;;  %v1413_v43 = vmul.f32 %v2374_v32, %v2374_v32 }
 0x18e   : > { %1997 = vst [vmem:[%s2366_s4 + $0x70] sm:$0xff] %v1897_v55   ;;  %v1471_v1 = vadd.f32 %v1470_v51, %v1408_v58  ;;  %v1415_v51 = vmul.f32 %v2382_v48, %v2382_v48 }
 0x18f   : > { %2013 = vst [vmem:[%s2366_s4 + $0xf0] sm:$0xff] %v1977_v63  }
 0x191   : > { %v855_v2 = vpop.f32.mrb[60].mxu0  ;;  %v2486_v3 = vpop.f32.mrb[60].mxu1 }
 0x192   : > { %v1339_v4 = vadd.f32 %v1338_v56, %v855_v2  ;;  %v1409_v7 = vmul.f32 %v855_v2, %v855_v2  ;;  %v857_v9 = vpop.f32.mrb[61].mxu0  ;;  %v985_v10 = vpop.f32.mrb[61].mxu1 }
 0x193   : > { %v858_v11 = vpop.f32.mrb[62].mxu0  ;;  %v2488_v15 = vpop.f32.mrb[62].mxu1 }
 0x194   : > { %v1472_v17 = vadd.f32 %v1471_v1, %v1409_v7  ;;  %v1902_v19 = vpack.c.bf16 %v858_v11, %v855_v2  ;;  %v1340_v20 = vadd.f32 %v1339_v4, %v858_v11  ;;  %v1410_v21 = vmul.f32 %v858_v11, %v858_v11  ;;  %v860_v25 = vpop.f32.mrb[63].mxu0  ;;  %v988_v26 = vpop.f32.mrb[63].mxu1 }
 0x195   : > { %v1982_v27 = vpack.c.bf16 %v2488_v15, %v2486_v3 }
 0x196   : > { %1998 = vst [vmem:[%s2366_s4 + $0x78] sm:$0xff] %v1902_v19   ;;  %v1341_v31 = vadd.f32 %v1340_v20, %v2361_v18  ;;  %v1473_v33 = vadd.f32 %v1472_v17, %v1410_v21 }
 0x197   : > { %2014 = vst [vmem:[%s2366_s4 + $0xf8] sm:$0xff] %v1982_v27  }
 0x198   : > { %v1342_v37 = vadd.f32 %v1341_v31, %v2368_v23  ;;  %v1474_v40 = vadd.f32 %v1473_v33, %v1411_v30  ;;  %v1416_v23 = vmul.f32 %v2384_v54, %v2384_v54 }
 0x19a   : > { %v1343_v44 = vadd.f32 %v1342_v37, %v2374_v32  ;;  %v1475_v45 = vadd.f32 %v1474_v40, %v1412_v34  ;;  %v1417_v32 = vmul.f32 %v2390_v0, %v2390_v0  ;;  %v1427_v37 = vmul.f32 %v2430_v28, %v2430_v28 }
 0x19c   : > { %v1344_v47 = vadd.f32 %v1343_v44, %v2376_v38  ;;  %v1476_v18 = vadd.f32 %v1475_v45, %v1413_v43  ;;  %v1418_v38 = vmul.f32 %v2392_v6, %v2392_v6  ;;  %v1428_v44 = vmul.f32 %v2432_v36, %v2432_v36 }
 0x19e   : > { %v1345_v55 = vadd.f32 %v1344_v47, %v2382_v48  ;;  %v1477_v56 = vadd.f32 %v1476_v18, %v1414_v46  ;;  %v1419_v48 = vmul.f32 %v2398_v16, %v2398_v16  ;;  %v1429_v46 = vmul.f32 %v2438_v49, %v2438_v49 }
 0x19f   : > { %v1430_v18 = vmul.f32 %v2440_v57, %v2440_v57 }
 0x1a0   : > { %v1346_v58 = vadd.f32 %v1345_v55, %v2384_v54  ;;  %v1478_v59 = vadd.f32 %v1477_v56, %v1415_v51  ;;  %v1420_v54 = vmul.f32 %v2400_v24, %v2400_v24  ;;  %v1431_v55 = vmul.f32 %v2446_v5, %v2446_v5 }
 0x1a2   : > { %v1347_v61 = vadd.f32 %v1346_v58, %v2390_v0  ;;  %v1479_v63 = vadd.f32 %v1478_v59, %v1416_v23  ;;  %v1421_v0 = vmul.f32 %v2406_v35, %v2406_v35  ;;  %v1432_v23 = vmul.f32 %v2448_v13, %v2448_v13 }
 0x1a3   : > { %v1433_v59 = vmul.f32 %v2454_v29, %v2454_v29 }
 0x1a4   : > { %v1348_v1 = vadd.f32 %v1347_v61, %v2392_v6  ;;  %v1480_v2 = vadd.f32 %v1479_v63, %v1417_v32  ;;  %v1422_v6 = vmul.f32 %v2408_v42, %v2408_v42  ;;  %v1434_v61 = vmul.f32 %v2456_v39, %v2456_v39 }
 0x1a6   : > { %v1481_v4 = vadd.f32 %v1480_v2, %v1418_v38  ;;  %v1349_v7 = vadd.f32 %v1348_v1, %v2398_v16  ;;  %v1423_v16 = vmul.f32 %v2414_v53, %v2414_v53  ;;  %v1435_v38 = vmul.f32 %v2462_v52, %v2462_v52 }
 0x1a7   : > { %v1436_v2 = vmul.f32 %v2464_v62, %v2464_v62 }
 0x1a8   : > { %v1350_v9 = vadd.f32 %v1349_v7, %v2400_v24  ;;  %v1482_v10 = vadd.f32 %v1481_v4, %v1419_v48  ;;  %v1424_v24 = vmul.f32 %v2416_v60, %v2416_v60  ;;  %v1437_v4 = vmul.f32 %v2470_v12, %v2470_v12 }
 0x1aa   : > { %v1351_v11 = vadd.f32 %v1350_v9, %v2406_v35  ;;  %v1483_v17 = vadd.f32 %v1482_v10, %v1420_v54  ;;  %v1425_v35 = vmul.f32 %v2422_v8, %v2422_v8  ;;  %v1438_v54 = vmul.f32 %v2472_v22, %v2472_v22 }
 0x1ab   : > { %v1439_v10 = vmul.f32 %v2478_v41, %v2478_v41 }
 0x1ac   : > { %v1352_v19 = vadd.f32 %v1351_v11, %v2408_v42  ;;  %v1484_v20 = vadd.f32 %v1483_v17, %v1421_v0  ;;  %v1426_v42 = vmul.f32 %v2424_v14, %v2424_v14  ;;  %v1441_v11 = vmul.f32 %v2486_v3, %v2486_v3 }
 0x1ae   : > { %v1353_v21 = vadd.f32 %v1352_v19, %v2414_v53  ;;  %v1485_v25 = vadd.f32 %v1484_v20, %v1422_v6  ;;  %v1442_v20 = vmul.f32 %v2488_v15, %v2488_v15 }
 0x1b0   : > { %v1354_v26 = vadd.f32 %v1353_v21, %v2416_v60  ;;  %v1486_v27 = vadd.f32 %v1485_v25, %v1423_v16 }
 0x1b2   : > { %v1355_v30 = vadd.f32 %v1354_v26, %v2422_v8  ;;  %v1487_v31 = vadd.f32 %v1486_v27, %v1424_v24 }
 0x1b4   : > { %v1356_v33 = vadd.f32 %v1355_v30, %v2424_v14  ;;  %v1488_v34 = vadd.f32 %v1487_v31, %v1425_v35 }
 0x1b6   : > { %v1357_v53 = vadd.f32 %v1356_v33, %v2430_v28  ;;  %v1489_v40 = vadd.f32 %v1488_v34, %v1426_v42 }
 0x1b8   : > { %v1490_v60 = vadd.f32 %v1489_v40, %v1427_v37  ;;  %v1358_v43 = vadd.f32 %v1357_v53, %v2432_v36 }
 0x1ba   : > { %v1491_v8 = vadd.f32 %v1490_v60, %v1428_v44  ;;  %v1359_v45 = vadd.f32 %v1358_v43, %v2438_v49 }
 0x1bc   : > { %v1492_v14 = vadd.f32 %v1491_v8, %v1429_v46  ;;  %v1360_v47 = vadd.f32 %v1359_v45, %v2440_v57 }
 0x1be   : > { %v1493_v28 = vadd.f32 %v1492_v14, %v1430_v18  ;;  %v1361_v51 = vadd.f32 %v1360_v47, %v2446_v5 }
 0x1c0   : > { %v1494_v56 = vadd.f32 %v1493_v28, %v1431_v55  ;;  %v1362_v36 = vadd.f32 %v1361_v51, %v2448_v13 }
 0x1c2   : > { %v1495_v58 = vadd.f32 %v1494_v56, %v1432_v23  ;;  %v1363_v49 = vadd.f32 %v1362_v36, %v2454_v29 }
 0x1c4   : > { %v1496_v32 = vadd.f32 %v1495_v58, %v1433_v59  ;;  %v1364_v57 = vadd.f32 %v1363_v49, %v2456_v39 }
 0x1c6   : > { %v1497_v63 = vadd.f32 %v1496_v32, %v1434_v61  ;;  %v1365_v5 = vadd.f32 %v1364_v57, %v2462_v52 }
 0x1c8   : > { %v1498_v1 = vadd.f32 %v1497_v63, %v1435_v38  ;;  %v1366_v13 = vadd.f32 %v1365_v5, %v2464_v62 }
 0x1ca   : > { %v1499_v48 = vadd.f32 %v1498_v1, %v1436_v2  ;;  %v1367_v29 = vadd.f32 %v1366_v13, %v2470_v12  ;;  %v1440_v12 = vmul.f32 %v2480_v50, %v2480_v50 }
 0x1cc   : > { %v1500_v7 = vadd.f32 %v1499_v48, %v1437_v4  ;;  %v1368_v39 = vadd.f32 %v1367_v29, %v2472_v22 }
 0x1ce   : > { %v1501_v52 = vadd.f32 %v1500_v7, %v1438_v54  ;;  %v1369_v9 = vadd.f32 %v1368_v39, %v2478_v41 }
 0x1d0   : > { %v1502_v62 = vadd.f32 %v1501_v52, %v1439_v10  ;;  %v1370_v0 = vadd.f32 %v1369_v9, %v2480_v50 }
 0x1d2   : > { %v1503_v17 = vadd.f32 %v1502_v62, %v1440_v12  ;;  %v1371_v6 = vadd.f32 %v1370_v0, %v2486_v3 }
 0x1d4   : > { %v1504_v22 = vadd.f32 %v1503_v17, %v1441_v11  ;;  %v1372_v19 = vadd.f32 %v1371_v6, %v2488_v15 }
 0x1d6   : > { %v1373_v41 = vrot.slane %v1372_v19, 4  ;;  %v1505_v16 = vadd.f32 %v1504_v22, %v1442_v20 }
 0x1d8   : > { %v1374_v21 = vadd.f32 %v1373_v41, %v1372_v19  ;;  %v1506_v25 = vrot.slane %v1505_v16, 4 }
 0x1da   : > { %v1375_v24 = vrot.slane %v1374_v21, 2  ;;  %v1507_v26 = vadd.f32 %v1506_v25, %v1505_v16 }
 0x1dc   : > { %v1376_v50 = vadd.f32 %v1375_v24, %v1374_v21  ;;  %v1508_v27 = vrot.slane %v1507_v26, 2 }
 0x1de   : > { %v1377_v35 = vrot.slane %v1376_v50, 1  ;;  %v1509_v30 = vadd.f32 %v1508_v27, %v1507_v26 }
 0x1e0   : > { %v1510_v3 = vrot.slane %v1509_v30, 1  ;;  %v1378_v15 = vadd.f32 %v1377_v35, %v1376_v50 }
 0x1e2   : > { %v1511_v31 = vadd.f32 %v1510_v3, %v1509_v30 }
 0x1e4   : > { %v1513_v42 = vsel %vm1512_vm0, %v1378_v15, %v1511_v31 }
 0x1e5   : > { %1514 = vst [vmem:[%s187_s6] sm:$0x3] %v1513_v42 }
 0x1e6 PF: > { %s14_s12 = sadd.s32 1, %s2174_s12  }
 0x1e7   : > { %p11_p5 = scmp.ge.s32.totalorder %s14_s12, 4  }
 0x1e9   :  { %13 = sbr.rel (!%p11_p5) target bundleno = 1 (0x1), region = 70 }

</bundles_post_ra>
